<compile_context>
chip_gen: v6e
topology: v6e:2x2x1
jax: 0.10.0
libtpu: 0.0.40
codegen_flags: <defaults>
</compile_context>

<pallas_src>
import jax
import jax.numpy as jnp
from jax.experimental import pallas as pl
from jax.experimental.pallas import tpu as pltpu

NEG_SLOPE = 0.01   # nn.LeakyReLU default negative_slope
_LANE = 128        # TPU lane width: pad all feature dims to a multiple of this
_SUBLANE = 8       # f32 sublane packing: batch tiles are multiples of this


def _round_up(x, m):
    return ((x + m - 1) // m) * m


def _leaky(v):
    return jnp.where(v > 0, v, NEG_SLOPE * v)


def _vmem_capacity_bytes():
    try:
        return int(pltpu.get_tpu_info().vmem_capacity_bytes)
    except Exception:
        return 64 << 20   # conservative (v7x-sized) fallback


def mlp_kernel(x_ref, w1_ref, b1_ref, w2_ref, b2_ref, w3_ref, b3_ref,
               w4_ref, b4_ref, o_ref):
    # Default matmul precision (no Precision.HIGHEST): single full-rate MXU
    # pass per dot; f32 accumulation via preferred_element_type.
    x = x_ref[...]
    h = _leaky(jnp.dot(x, w1_ref[...],
                       preferred_element_type=jnp.float32) + b1_ref[...])
    # Dropout (eval mode) == identity.
    h = _leaky(jnp.dot(h, w2_ref[...],
                       preferred_element_type=jnp.float32) + b2_ref[...])
    h = _leaky(jnp.dot(h, w3_ref[...],
                       preferred_element_type=jnp.float32) + b3_ref[...])
    y = _leaky(jnp.dot(h, w4_ref[...],
                       preferred_element_type=jnp.float32) + b4_ref[...])
    o_ref[...] = y.astype(o_ref.dtype)
    # TODO(synk): if hid grows so the single-buffered resident weights exceed
    # the VMEM cap, split the feature (K) dim into an "arbitrary" grid axis
    # with an f32 accumulator scratch instead of keeping all 4 matrices resident.


def prepare_params(params, *, dtype=None):
    """Pad weights/biases to lane-dense shapes ONCE, outside the forward.

    Pass dtype=jnp.bfloat16 to halve resident-weight VMEM and weight DMA
    (recommended on v7x's 64 MiB VMEM for large hidden dims); matmuls still
    accumulate in f32.  Zero-padded hidden units stay exactly zero through
    bias-add and LeakyReLU, so padding never changes the logical result.
    """
    in_dim, hid = params["w1"].shape
    out_dim = params["w4"].shape[1]
    in_p = _round_up(in_dim, _LANE)
    hid_p = _round_up(hid, _LANE)
    out_p = _round_up(out_dim, _LANE)

    def pad2(a, rows, cols):
        if dtype is not None:
            a = a.astype(dtype)
        return jnp.pad(a, ((0, rows - a.shape[0]), (0, cols - a.shape[1])))

    prepared = {
        "w1": pad2(params["w1"], in_p, hid_p),  "b1": pad2(params["b1"], 1, hid_p),
        "w2": pad2(params["w2"], hid_p, hid_p), "b2": pad2(params["b2"], 1, hid_p),
        "w3": pad2(params["w3"], hid_p, hid_p), "b3": pad2(params["b3"], 1, hid_p),
        "w4": pad2(params["w4"], hid_p, out_p), "b4": pad2(params["b4"], 1, out_p),
    }
    meta = dict(in_dim=in_dim, hid_dim=hid, out_dim=out_dim,
                in_p=in_p, hid_p=hid_p, out_p=out_p)
    return prepared, meta


def embedding_forward(x, prepared, meta, *, tile_m=None):
    """x: (N, in_dim).  prepared/meta: output of prepare_params()."""
    N, in_dim = x.shape
    assert in_dim == meta["in_dim"]
    in_p, hid_p, out_p = meta["in_p"], meta["hid_p"], meta["out_p"]
    out_dim = meta["out_dim"]

    # ---- batch tiling.
    n_rows = _round_up(max(N, _SUBLANE), _SUBLANE)
    if tile_m is None:
        if n_rows <= 1024:
            # Tiny/medium batch: one grid step — no per-step overhead and no
            # megacore split duplicating the resident-weight DMA per core.
            tile_m = n_rows
        else:
            # Large batch: big tiles amortize per-step DMA + ~0.35us overhead
            # (weights are resident, so per-step cost is only x/out traffic);
            # keep >=4 steps so a v7x megacore split still pipelines (>=2/core).
            tile_m = min(1024, _round_up(pl.cdiv(n_rows, 4), _SUBLANE))
    tile_m = max(_SUBLANE, _round_up(tile_m, _SUBLANE))
    n_p = _round_up(n_rows, tile_m)
    steps = n_p // tile_m
    grid = (steps,)
    semantics = ("parallel",) if steps > 1 else ("arbitrary",)

    x_p = jnp.pad(x, ((0, n_p - N), (0, in_p - in_dim)))

    # ---- VMEM budget: single-buffered weights + double-buffered x/out tiles
    # + live f32 intermediates; one 25% margin + 4 MiB fixed headroom (no
    # double hedge).  Cap generation-aware: ~85% of physical VMEM
    # (128 MiB on v5e/v6e, 64 MiB on v7x).
    w_bytes = sum(int(a.size) * a.dtype.itemsize for a in prepared.values())
    x_bytes = 2 * tile_m * in_p * jnp.dtype(x.dtype).itemsize
    o_bytes = 2 * tile_m * out_p * jnp.dtype(x.dtype).itemsize
    act_bytes = 2 * tile_m * hid_p * 4
    need = int((w_bytes + x_bytes + o_bytes + act_bytes) * 1.25) + (4 << 20)
    vmem_limit = int(min(max(need, 16 << 20),
                         int(0.85 * _vmem_capacity_bytes())))

    def resident(shape):
        # Grid-invariant block: single-buffer it (double-buffering a constant
        # block only doubles its VMEM residency, buys nothing).
        return pl.BlockSpec(shape, lambda i: (0, 0), pipeline_mode=pl.Buffered(1))

    y_p = pl.pallas_call(
        mlp_kernel,
        out_shape=jax.ShapeDtypeStruct((n_p, out_p), x.dtype),
        grid_spec=pltpu.PrefetchScalarGridSpec(
            num_scalar_prefetch=0,
            grid=grid,
            in_specs=[
                pl.BlockSpec((tile_m, in_p), lambda i: (i, 0)),   # x tile (pipelined)
                resident((in_p, hid_p)),  resident((1, hid_p)),   # w1, b1
                resident((hid_p, hid_p)), resident((1, hid_p)),   # w2, b2
                resident((hid_p, hid_p)), resident((1, hid_p)),   # w3, b3
                resident((hid_p, out_p)), resident((1, out_p)),   # w4, b4
            ],
            out_specs=pl.BlockSpec((tile_m, out_p), lambda i: (i, 0)),
        ),
        compiler_params=pltpu.CompilerParams(
            dimension_semantics=semantics,
            vmem_limit_bytes=vmem_limit),
    )(x_p, prepared["w1"], prepared["b1"], prepared["w2"], prepared["b2"],
      prepared["w3"], prepared["b3"], prepared["w4"], prepared["b4"])

    return y_p[:N, :out_dim]


def init_params(key, in_dim, hid_dim, out_dim):
    """Matches torch.nn.init.kaiming_normal_ (fan_in, gain=sqrt(2)) and bias=0.01.
    Weights stored as (in_features, out_features)."""
    dims = [(in_dim, hid_dim), (hid_dim, hid_dim), (hid_dim, hid_dim),
            (hid_dim, out_dim)]
    params = {}
    for idx, (fan_in, fan_out) in enumerate(dims, start=1):
        key, sub = jax.random.split(key)
        std = (2.0 / fan_in) ** 0.5
        params[f"w{idx}"] = std * jax.random.normal(
            sub, (fan_in, fan_out), dtype=jnp.float32)
        params[f"b{idx}"] = jnp.full((1, fan_out), 0.01, dtype=jnp.float32)
    return params


def reference_forward(x, params):
    # Strict f32 reference (HIGHEST precision) for validation.
    h = x
    for i in range(1, 5):
        h = jnp.dot(h, params[f"w{i}"],
                    precision=jax.lax.Precision.HIGHEST) + params[f"b{i}"]
        h = jnp.where(h > 0, h, NEG_SLOPE * h)
    return h


if __name__ == "__main__":
    # Small shapes consistent with the module's MLP forward.
    N, in_dim, hid_dim, out_dim = 256, 16, 32, 16

    key = jax.random.PRNGKey(0)
    key, xk = jax.random.split(key)
    x = jax.random.normal(xk, (N, in_dim), dtype=jnp.float32)

    params = init_params(key, in_dim, hid_dim, out_dim)

    # Pad (and optionally bf16-cast) the parameter set once, outside the
    # per-call forward.
    prepared, meta = prepare_params(params)

    y = embedding_forward(x, prepared, meta)
    y = jax.block_until_ready(y)

    # Sanity check against strict-f32 reference.  The kernel uses default MXU
    # precision (f32 accumulation), so expect small quantization-level
    # differences vs. HIGHEST — validate with a norm-relative tolerance.
    y_ref = reference_forward(x, params)
    assert y.shape == (N, out_dim)
    rel_err = float(jnp.linalg.norm(y - y_ref) / jnp.linalg.norm(y_ref))
    assert rel_err < 5e-2, rel_err

    print("KERNEL_OK")
</pallas_src>

<mosaic_0001>
module attributes {stable_mosaic.version = 11 : i64} {
  func.func @mlp_kernel(%arg0: i32, %arg1: memref<256x128xf32, #tpu.memory_space<vmem>>, %arg2: memref<128x128xf32, #tpu.memory_space<vmem>>, %arg3: memref<1x128xf32, #tpu.memory_space<vmem>>, %arg4: memref<128x128xf32, #tpu.memory_space<vmem>>, %arg5: memref<1x128xf32, #tpu.memory_space<vmem>>, %arg6: memref<128x128xf32, #tpu.memory_space<vmem>>, %arg7: memref<1x128xf32, #tpu.memory_space<vmem>>, %arg8: memref<128x128xf32, #tpu.memory_space<vmem>>, %arg9: memref<1x128xf32, #tpu.memory_space<vmem>>, %arg10: memref<256x128xf32, #tpu.memory_space<vmem>>) attributes {dimension_semantics = [#tpu.dimension_semantics<arbitrary>], iteration_bounds = array<i64: 1>, scalar_prefetch = 0 : i64, scratch_operands = 0 : i64, tpu.core_type = #tpu.core_type<tc>, window_params = [{transform_indices = @transform_0, window_bounds = array<i64: 256, 128>}, {pipeline_mode = #tpu.pipeline_mode<synchronous>, transform_indices = @transform_1, window_bounds = array<i64: 128, 128>}, {pipeline_mode = #tpu.pipeline_mode<synchronous>, transform_indices = @transform_2, window_bounds = array<i64: 1, 128>}, {pipeline_mode = #tpu.pipeline_mode<synchronous>, transform_indices = @transform_3, window_bounds = array<i64: 128, 128>}, {pipeline_mode = #tpu.pipeline_mode<synchronous>, transform_indices = @transform_4, window_bounds = array<i64: 1, 128>}, {pipeline_mode = #tpu.pipeline_mode<synchronous>, transform_indices = @transform_5, window_bounds = array<i64: 128, 128>}, {pipeline_mode = #tpu.pipeline_mode<synchronous>, transform_indices = @transform_6, window_bounds = array<i64: 1, 128>}, {pipeline_mode = #tpu.pipeline_mode<synchronous>, transform_indices = @transform_7, window_bounds = array<i64: 128, 128>}, {pipeline_mode = #tpu.pipeline_mode<synchronous>, transform_indices = @transform_8, window_bounds = array<i64: 1, 128>}, {transform_indices = @transform_9, window_bounds = array<i64: 256, 128>}]} {
    %c0 = arith.constant 0 : index
    %c0_0 = arith.constant 0 : index
    %0 = vector.load %arg1[%c0, %c0_0] : memref<256x128xf32, #tpu.memory_space<vmem>>, vector<256x128xf32>
    %c0_1 = arith.constant 0 : index
    %c0_2 = arith.constant 0 : index
    %1 = vector.load %arg2[%c0_1, %c0_2] : memref<128x128xf32, #tpu.memory_space<vmem>>, vector<128x128xf32>
    %cst = arith.constant dense<0.000000e+00> : vector<256x128xf32>
    %2 = tpu.matmul %0, %1, %cst {dimension_numbers = #tpu.dot_dimension_numbers<[1], [0], [0], [1], [0, 0, 1, 1], [], []>} : vector<256x128xf32>, vector<128x128xf32>, vector<256x128xf32> -> vector<256x128xf32>
    %c0_3 = arith.constant 0 : index
    %c0_4 = arith.constant 0 : index
    %3 = vector.load %arg3[%c0_3, %c0_4] : memref<1x128xf32, #tpu.memory_space<vmem>>, vector<1x128xf32>
    %4 = vector.broadcast %3 : vector<1x128xf32> to vector<256x128xf32>
    %5 = arith.addf %2, %4 : vector<256x128xf32>
    %cst_5 = arith.constant 0.000000e+00 : f32
    %6 = vector.broadcast %cst_5 : f32 to vector<256x128xf32>
    %7 = arith.cmpf ogt, %5, %6 : vector<256x128xf32>
    %cst_6 = arith.constant 0.00999999977 : f32
    %8 = vector.broadcast %cst_6 : f32 to vector<256x128xf32>
    %9 = arith.mulf %8, %5 : vector<256x128xf32>
    %10 = arith.select %7, %5, %9 : vector<256x128xi1>, vector<256x128xf32>
    %c0_7 = arith.constant 0 : index
    %c0_8 = arith.constant 0 : index
    %11 = vector.load %arg4[%c0_7, %c0_8] : memref<128x128xf32, #tpu.memory_space<vmem>>, vector<128x128xf32>
    %cst_9 = arith.constant dense<0.000000e+00> : vector<256x128xf32>
    %12 = tpu.matmul %10, %11, %cst_9 {dimension_numbers = #tpu.dot_dimension_numbers<[1], [0], [0], [1], [0, 0, 1, 1], [], []>} : vector<256x128xf32>, vector<128x128xf32>, vector<256x128xf32> -> vector<256x128xf32>
    %c0_10 = arith.constant 0 : index
    %c0_11 = arith.constant 0 : index
    %13 = vector.load %arg5[%c0_10, %c0_11] : memref<1x128xf32, #tpu.memory_space<vmem>>, vector<1x128xf32>
    %14 = vector.broadcast %13 : vector<1x128xf32> to vector<256x128xf32>
    %15 = arith.addf %12, %14 : vector<256x128xf32>
    %cst_12 = arith.constant 0.000000e+00 : f32
    %16 = vector.broadcast %cst_12 : f32 to vector<256x128xf32>
    %17 = arith.cmpf ogt, %15, %16 : vector<256x128xf32>
    %cst_13 = arith.constant 0.00999999977 : f32
    %18 = vector.broadcast %cst_13 : f32 to vector<256x128xf32>
    %19 = arith.mulf %18, %15 : vector<256x128xf32>
    %20 = arith.select %17, %15, %19 : vector<256x128xi1>, vector<256x128xf32>
    %c0_14 = arith.constant 0 : index
    %c0_15 = arith.constant 0 : index
    %21 = vector.load %arg6[%c0_14, %c0_15] : memref<128x128xf32, #tpu.memory_space<vmem>>, vector<128x128xf32>
    %cst_16 = arith.constant dense<0.000000e+00> : vector<256x128xf32>
    %22 = tpu.matmul %20, %21, %cst_16 {dimension_numbers = #tpu.dot_dimension_numbers<[1], [0], [0], [1], [0, 0, 1, 1], [], []>} : vector<256x128xf32>, vector<128x128xf32>, vector<256x128xf32> -> vector<256x128xf32>
    %c0_17 = arith.constant 0 : index
    %c0_18 = arith.constant 0 : index
    %23 = vector.load %arg7[%c0_17, %c0_18] : memref<1x128xf32, #tpu.memory_space<vmem>>, vector<1x128xf32>
    %24 = vector.broadcast %23 : vector<1x128xf32> to vector<256x128xf32>
    %25 = arith.addf %22, %24 : vector<256x128xf32>
    %cst_19 = arith.constant 0.000000e+00 : f32
    %26 = vector.broadcast %cst_19 : f32 to vector<256x128xf32>
    %27 = arith.cmpf ogt, %25, %26 : vector<256x128xf32>
    %cst_20 = arith.constant 0.00999999977 : f32
    %28 = vector.broadcast %cst_20 : f32 to vector<256x128xf32>
    %29 = arith.mulf %28, %25 : vector<256x128xf32>
    %30 = arith.select %27, %25, %29 : vector<256x128xi1>, vector<256x128xf32>
    %c0_21 = arith.constant 0 : index
    %c0_22 = arith.constant 0 : index
    %31 = vector.load %arg8[%c0_21, %c0_22] : memref<128x128xf32, #tpu.memory_space<vmem>>, vector<128x128xf32>
    %cst_23 = arith.constant dense<0.000000e+00> : vector<256x128xf32>
    %32 = tpu.matmul %30, %31, %cst_23 {dimension_numbers = #tpu.dot_dimension_numbers<[1], [0], [0], [1], [0, 0, 1, 1], [], []>} : vector<256x128xf32>, vector<128x128xf32>, vector<256x128xf32> -> vector<256x128xf32>
    %c0_24 = arith.constant 0 : index
    %c0_25 = arith.constant 0 : index
    %33 = vector.load %arg9[%c0_24, %c0_25] : memref<1x128xf32, #tpu.memory_space<vmem>>, vector<1x128xf32>
    %34 = vector.broadcast %33 : vector<1x128xf32> to vector<256x128xf32>
    %35 = arith.addf %32, %34 : vector<256x128xf32>
    %cst_26 = arith.constant 0.000000e+00 : f32
    %36 = vector.broadcast %cst_26 : f32 to vector<256x128xf32>
    %37 = arith.cmpf ogt, %35, %36 : vector<256x128xf32>
    %cst_27 = arith.constant 0.00999999977 : f32
    %38 = vector.broadcast %cst_27 : f32 to vector<256x128xf32>
    %39 = arith.mulf %38, %35 : vector<256x128xf32>
    %40 = arith.select %37, %35, %39 : vector<256x128xi1>, vector<256x128xf32>
    %c0_28 = arith.constant 0 : index
    %c0_29 = arith.constant 0 : index
    %41 = vector.load %arg10[%c0_28, %c0_29] : memref<256x128xf32, #tpu.memory_space<vmem>>, vector<256x128xf32>
    tpu.vector_store %arg10[%c0_28, %c0_29], %40 {strides = array<i32>} : memref<256x128xf32, #tpu.memory_space<vmem>>, vector<256x128xf32>,
    return
  }
  func.func @transform_0(%arg0: i32) -> (i32, i32) {
    %c0_i32 = arith.constant 0 : i32
    %c0_i32_0 = arith.constant 0 : i32
    return %arg0, %c0_i32 : i32, i32
  }
  func.func @transform_1(%arg0: i32) -> (i32, i32) {
    %c0_i32 = arith.constant 0 : i32
    %c0_i32_0 = arith.constant 0 : i32
    %c0_i32_1 = arith.constant 0 : i32
    return %c0_i32, %c0_i32_0 : i32, i32
  }
  func.func @transform_2(%arg0: i32) -> (i32, i32) {
    %c0_i32 = arith.constant 0 : i32
    %c0_i32_0 = arith.constant 0 : i32
    %c0_i32_1 = arith.constant 0 : i32
    return %c0_i32, %c0_i32_0 : i32, i32
  }
  func.func @transform_3(%arg0: i32) -> (i32, i32) {
    %c0_i32 = arith.constant 0 : i32
    %c0_i32_0 = arith.constant 0 : i32
    %c0_i32_1 = arith.constant 0 : i32
    return %c0_i32, %c0_i32_0 : i32, i32
  }
  func.func @transform_4(%arg0: i32) -> (i32, i32) {
    %c0_i32 = arith.constant 0 : i32
    %c0_i32_0 = arith.constant 0 : i32
    %c0_i32_1 = arith.constant 0 : i32
    return %c0_i32, %c0_i32_0 : i32, i32
  }
  func.func @transform_5(%arg0: i32) -> (i32, i32) {
    %c0_i32 = arith.constant 0 : i32
    %c0_i32_0 = arith.constant 0 : i32
    %c0_i32_1 = arith.constant 0 : i32
    return %c0_i32, %c0_i32_0 : i32, i32
  }
  func.func @transform_6(%arg0: i32) -> (i32, i32) {
    %c0_i32 = arith.constant 0 : i32
    %c0_i32_0 = arith.constant 0 : i32
    %c0_i32_1 = arith.constant 0 : i32
    return %c0_i32, %c0_i32_0 : i32, i32
  }
  func.func @transform_7(%arg0: i32) -> (i32, i32) {
    %c0_i32 = arith.constant 0 : i32
    %c0_i32_0 = arith.constant 0 : i32
    %c0_i32_1 = arith.constant 0 : i32
    return %c0_i32, %c0_i32_0 : i32, i32
  }
  func.func @transform_8(%arg0: i32) -> (i32, i32) {
    %c0_i32 = arith.constant 0 : i32
    %c0_i32_0 = arith.constant 0 : i32
    %c0_i32_1 = arith.constant 0 : i32
    return %c0_i32, %c0_i32_0 : i32, i32
  }
  func.func @transform_9(%arg0: i32) -> (i32, i32) {
    %c0_i32 = arith.constant 0 : i32
    %c0_i32_0 = arith.constant 0 : i32
    return %arg0, %c0_i32 : i32, i32
  }
}

</mosaic_0001>

<bundles_post_ra>
// kernel: tpu_custom_call.1
= control target key start
LH: loop header
LB: loop body
LE: loop exit
PB: predicated region body
PF: predicated region fallthrough
CT: control target
= control target key end

     0   :  { %14 = vsyncpa [#allocation3], 0  ;;  %s2454_s0 = inlined_call_operand.hbm [shape: f32[256,128], index: 0, kind: input, shape index: {}]   ;;  %s2455_s1 = inlined_call_operand.hbm [shape: f32[128,128], index: 1, kind: input, shape index: {}]   ;;  %s2456_s2 = inlined_call_operand.vmem [shape: f32[1,128], index: 2, kind: input, shape index: {}]   ;;  %s2457_s3 = inlined_call_operand.hbm [shape: f32[128,128], index: 3, kind: input, shape index: {}]   ;;  %s2458_s4 = inlined_call_operand.vmem [shape: f32[1,128], index: 4, kind: input, shape index: {}]   ;;  %s2459_s5 = inlined_call_operand.hbm [shape: f32[128,128], index: 5, kind: input, shape index: {}]   ;;  %s2460_s6 = inlined_call_operand.vmem [shape: f32[1,128], index: 6, kind: input, shape index: {}]   ;;  %s2461_s7 = inlined_call_operand.hbm [shape: f32[128,128], index: 7, kind: input, shape index: {}]   ;;  %s2462_s8 = inlined_call_operand.vmem [shape: f32[1,128], index: 8, kind: input, shape index: {}]   ;;  %s2463_s9 = inlined_call_operand.hbm [shape: f32[256,128], index: 9, kind: output, shape index: {}]  }
   0x1   :  { %15 = vsyncpa [#allocation6], 0 }
   0x2   :  { %16 = vsyncpa [#allocation9], 0 }
   0x3   :  { %17 = vsyncpa [#allocation4], 0  ;;  %s2212_s30 = smov [#allocation5]   ;;  %s2213_s11 = smov [#allocation8]  }
   0x4   :  { %s35_s10 = sshll.u32 %s2212_s30, 4  ;;  %s63_s12 = sshll.u32 %s2213_s11, 4  ;;  %s36_s10 = int_to_ptr.vmem [resolvable:$true] %s35_s10  ;;  %s64_s12 = int_to_ptr.vmem [resolvable:$true] %s63_s12 }
   0x5   :  { %s2092_s13 = scalar_lea.vmem %s36_s10, 2048  ;;  %p2097_p1 = scmp.lt.s32.totalorder %s36_s10, %s36_s10 }
   0x6   :  { %p2093_p0 = scmp.ne.s32.totalorder %s36_s10, %s2092_s13  ;;  %p2098_p2 = scmp.lt.s32.totalorder %s2092_s13, %s2092_s13 }
   0x8   :  { %p2099_p3 = por %p2098_p2, %p2097_p1 }
   0xa   :  { %p2100_p4 = pnand %p2099_p3, %p2093_p0 }
   0xc   :  { %2103 = shalt.err (!%p2100_p4)
}
   0xd   :  { %s2214_s14 = smov 128   ;;  %s2215_s15 = smov 8  }
   0xe   :  { %41 = dma.hbm_to_vmem [thread:$0]  %s2455_s1, 2048, %s36_s10, [#allocation6], %s2214_s14, %s2214_s14, %s2215_s15  }
   0xf   :  { %s2112_s18 = scalar_lea.vmem %s64_s12, 2048  ;;  %p2117_p6 = scmp.lt.s32.totalorder %s64_s12, %s64_s12 }
  0x10   :  { %p2113_p5 = scmp.ne.s32.totalorder %s64_s12, %s2112_s18  ;;  %p2118_p7 = scmp.lt.s32.totalorder %s2112_s18, %s2112_s18 }
  0x12   :  { %p2119_p8 = por %p2118_p7, %p2117_p6 }
  0x14   :  { %p2120_p9 = pnand %p2119_p8, %p2113_p5 }
  0x16   :  { %2123 = shalt.err (!%p2120_p9)
}
  0x17   :  { %69 = dma.hbm_to_vmem [thread:$0]  %s2459_s5, 2048, %s64_s12, [#allocation9], %s2214_s14, %s2214_s14, %s2215_s15  }
  0x18   :  { %s2216_s21 = smov [#allocation2]   ;;  %s2217_s23 = smov [#allocation7]  }
  0x19   :  { %s23_s22 = sshll.u32 %s2216_s21, 4  ;;  %s49_s24 = sshll.u32 %s2217_s23, 4  ;;  %s24_s22 = int_to_ptr.vmem [resolvable:$true] %s23_s22  ;;  %s50_s24 = int_to_ptr.vmem [resolvable:$true] %s49_s24 }
  0x1a   :  { %s2132_s1 = scalar_lea.vmem %s24_s22, 4096  ;;  %p2137_p11 = scmp.lt.s32.totalorder %s24_s22, %s24_s22 }
  0x1b   :  { %p2133_p10 = scmp.ne.s32.totalorder %s24_s22, %s2132_s1  ;;  %p2138_p12 = scmp.lt.s32.totalorder %s2132_s1, %s2132_s1 }
  0x1d   :  { %p2139_p13 = por %p2138_p12, %p2137_p11 }
  0x1f   :  { %p2140_p0 = pnand %p2139_p13, %p2133_p10 }
  0x21   :  { %2143 = shalt.err (!%p2140_p0)
}
  0x22   :  { %29 = dma.hbm_to_vmem [thread:$0]  %s2454_s0, 4096, %s24_s22, [#allocation3], %s2214_s14, %s2214_s14, %s2215_s15  }
  0x23   :  { %s2152_s5 = scalar_lea.vmem %s50_s24, 2048  ;;  %p2157_p2 = scmp.lt.s32.totalorder %s50_s24, %s50_s24 }
  0x24   :  { %p2153_p1 = scmp.ne.s32.totalorder %s50_s24, %s2152_s5  ;;  %p2158_p3 = scmp.lt.s32.totalorder %s2152_s5, %s2152_s5 }
  0x26   :  { %p2159_p4 = por %p2158_p3, %p2157_p2 }
  0x28   :  { %p2160_p5 = pnand %p2159_p4, %p2153_p1 }
  0x2a   :  { %2163 = shalt.err (!%p2160_p5)
}
  0x2b   :  { %55 = dma.hbm_to_vmem [thread:$0]  %s2457_s3, 2048, %s50_s24, [#allocation6], %s2214_s14, %s2214_s14, %s2215_s15  }
  0x2c   :  { %s2218_s29 = smov [#allocation10]  }
  0x2d   :  { %s77_s30 = sshll.u32 %s2218_s29, 4  ;;  %s78_s30 = int_to_ptr.vmem [resolvable:$true] %s77_s30 }
  0x2e   :  { %s2172_s10 = scalar_lea.vmem %s78_s30, 2048  ;;  %p2177_p7 = scmp.lt.s32.totalorder %s78_s30, %s78_s30 }
  0x2f   :  { %p2173_p6 = scmp.ne.s32.totalorder %s78_s30, %s2172_s10  ;;  %p2178_p8 = scmp.lt.s32.totalorder %s2172_s10, %s2172_s10 }
  0x31   :  { %p2179_p9 = por %p2178_p8, %p2177_p7 }
  0x33   :  { %p2180_p10 = pnand %p2179_p9, %p2173_p6 }
  0x35   :  { %2183 = shalt.err (!%p2180_p10)
}
  0x36   :  { %83 = dma.hbm_to_vmem [thread:$0]  %s2461_s7, 2048, %s78_s30, [#allocation9], %s2214_s14, %s2214_s14, %s2215_s15  }
  0x37   :  { %2204 = dma.done.wait [#allocation3], 4096  }
  0x38   :  { %2205 = vsyncadd [#allocation3], 4294963200 }
  0x39   :  { %2206 = dma.done.wait [#allocation6], 4096  }
  0x3a   :  { %2207 = vsyncadd [#allocation6], 4294963200 }
  0x3b   :  { %2208 = dma.done.wait [#allocation9], 4096  }
  0x3c   :  { %2209 = vsyncadd [#allocation9], 4294963200  ;;  %v148_v0 = vld [vmem:[#allocation5 + $0x78] sm:$0xff]  ;;  %v147_v1 = vld [vmem:[#allocation5 + $0x70] sm:$0xff] }
  0x3d   :  { %1756 = vmatprep.subr.mxu0 %v148_v0  ;;  %v146_v2 = vld [vmem:[#allocation5 + $0x68] sm:$0xff]  ;;  %v145_v3 = vld [vmem:[#allocation5 + $0x60] sm:$0xff]  ;;  %v144_v5 = vld [vmem:[#allocation5 + $0x58] sm:$0xff] }
  0x3e   :  { %1757 = vmatpush3.msra.mxu0 %v148_v0  ;;  %v101_v4 = vld [vmem:[#allocation2] sm:$0xff]  ;;  %v143_v6 = vld [vmem:[#allocation5 + $0x50] sm:$0xff]  ;;  %v142_v7 = vld [vmem:[#allocation5 + $0x48] sm:$0xff] }
  0x3f   :  { %1758 = vmatprep.subr.mxu0 %v147_v1  ;;  %1788 = vmatprep.mubr.f32.mxu0 %v101_v4  ;;  %v141_v8 = vld [vmem:[#allocation5 + $0x40] sm:$0xff]  ;;  %v140_v9 = vld [vmem:[#allocation5 + $0x38] sm:$0xff]  ;;  %v139_v10 = vld [vmem:[#allocation5 + $0x30] sm:$0xff] }
  0x40   :  { %1759 = vmatpush3.msra.mxu0 %v147_v1  ;;  %v492_v11 = vld [vmem:[#allocation7 + $0x78] sm:$0xff]  ;;  %v491_v12 = vld [vmem:[#allocation7 + $0x70] sm:$0xff]  ;;  %v138_v13 = vld [vmem:[#allocation5 + $0x28] sm:$0xff] }
  0x41   :  { %1760 = vmatprep.subr.mxu0 %v146_v2  ;;  %1836 = vmatprep.subr.mxu1 %v492_v11  ;;  %v490_v14 = vld [vmem:[#allocation7 + $0x68] sm:$0xff]  ;;  %v137_v15 = vld [vmem:[#allocation5 + $0x20] sm:$0xff]  ;;  %v136_v17 = vld [vmem:[#allocation5 + $0x18] sm:$0xff] }
  0x42   :  { %1761 = vmatpush3.msra.mxu0 %v146_v2  ;;  %1837 = vmatpush3.msra.mxu1 %v492_v11  ;;  %v489_v16 = vld [vmem:[#allocation7 + $0x60] sm:$0xff]  ;;  %v488_v18 = vld [vmem:[#allocation7 + $0x58] sm:$0xff]  ;;  %v135_v19 = vld [vmem:[#allocation5 + $0x10] sm:$0xff] }
  0x43   :  { %1762 = vmatprep.subr.mxu0 %v145_v3  ;;  %1838 = vmatprep.subr.mxu1 %v491_v12  ;;  %v487_v20 = vld [vmem:[#allocation7 + $0x50] sm:$0xff]  ;;  %v134_v21 = vld [vmem:[#allocation5 + $0x8] sm:$0xff]  ;;  %v133_v23 = vld [vmem:[#allocation5] sm:$0xff] }
  0x44   :  { %1763 = vmatpush3.msra.mxu0 %v145_v3  ;;  %1839 = vmatpush3.msra.mxu1 %v491_v12  ;;  %v486_v22 = vld [vmem:[#allocation7 + $0x48] sm:$0xff]  ;;  %v485_v24 = vld [vmem:[#allocation7 + $0x40] sm:$0xff]  ;;  %v484_v26 = vld [vmem:[#allocation7 + $0x38] sm:$0xff] }
  0x45   :  { %1764 = vmatprep.subr.mxu0 %v144_v5  ;;  %1840 = vmatprep.subr.mxu1 %v490_v14  ;;  %v102_v25 = vld [vmem:[#allocation2 + $0x8] sm:$0xff]  ;;  %v103_v27 = vld [vmem:[#allocation2 + $0x10] sm:$0xff]  ;;  %v104_v29 = vld [vmem:[#allocation2 + $0x18] sm:$0xff] }
  0x46   :  { %1765 = vmatpush3.msra.mxu0 %v144_v5  ;;  %1841 = vmatpush3.msra.mxu1 %v490_v14  ;;  %v483_v28 = vld [vmem:[#allocation7 + $0x30] sm:$0xff]  ;;  %v482_v30 = vld [vmem:[#allocation7 + $0x28] sm:$0xff]  ;;  %v105_v31 = vld [vmem:[#allocation2 + $0x20] sm:$0xff] }
  0x47   :  { %1766 = vmatprep.subr.mxu0 %v143_v6  ;;  %1842 = vmatprep.subr.mxu1 %v489_v16  ;;  %v481_v32 = vld [vmem:[#allocation7 + $0x20] sm:$0xff]  ;;  %v106_v33 = vld [vmem:[#allocation2 + $0x28] sm:$0xff]  ;;  %v107_v34 = vld [vmem:[#allocation2 + $0x30] sm:$0xff] }
  0x48   :  { %1767 = vmatpush3.msra.mxu0 %v143_v6  ;;  %1843 = vmatpush3.msra.mxu1 %v489_v16  ;;  %v108_v35 = vld [vmem:[#allocation2 + $0x38] sm:$0xff]  ;;  %v109_v36 = vld [vmem:[#allocation2 + $0x40] sm:$0xff]  ;;  %v110_v37 = vld [vmem:[#allocation2 + $0x48] sm:$0xff] }
  0x49   :  { %1768 = vmatprep.subr.mxu0 %v142_v7  ;;  %1844 = vmatprep.subr.mxu1 %v488_v18  ;;  %v111_v38 = vld [vmem:[#allocation2 + $0x50] sm:$0xff]  ;;  %v112_v39 = vld [vmem:[#allocation2 + $0x58] sm:$0xff]  ;;  %v113_v40 = vld [vmem:[#allocation2 + $0x60] sm:$0xff] }
  0x4a   :  { %1769 = vmatpush3.msra.mxu0 %v142_v7  ;;  %1845 = vmatpush3.msra.mxu1 %v488_v18  ;;  %v114_v41 = vld [vmem:[#allocation2 + $0x68] sm:$0xff]  ;;  %v115_v42 = vld [vmem:[#allocation2 + $0x70] sm:$0xff]  ;;  %v116_v43 = vld [vmem:[#allocation2 + $0x78] sm:$0xff] }
  0x4b   :  { %1770 = vmatprep.subr.mxu0 %v141_v8  ;;  %1846 = vmatprep.subr.mxu1 %v487_v20  ;;  %v117_v44 = vld [vmem:[#allocation2 + $0x80] sm:$0xff]  ;;  %v118_v45 = vld [vmem:[#allocation2 + $0x88] sm:$0xff]  ;;  %v119_v46 = vld [vmem:[#allocation2 + $0x90] sm:$0xff] }
  0x4c   :  { %1771 = vmatpush3.msra.mxu0 %v141_v8  ;;  %1847 = vmatpush3.msra.mxu1 %v487_v20  ;;  %v120_v47 = vld [vmem:[#allocation2 + $0x98] sm:$0xff]  ;;  %v121_v48 = vld [vmem:[#allocation2 + $0xa0] sm:$0xff]  ;;  %v122_v49 = vld [vmem:[#allocation2 + $0xa8] sm:$0xff] }
  0x4d   :  { %1772 = vmatprep.subr.mxu0 %v140_v9  ;;  %1848 = vmatprep.subr.mxu1 %v486_v22  ;;  %v123_v50 = vld [vmem:[#allocation2 + $0xb0] sm:$0xff]  ;;  %v124_v51 = vld [vmem:[#allocation2 + $0xb8] sm:$0xff]  ;;  %v125_v52 = vld [vmem:[#allocation2 + $0xc0] sm:$0xff] }
  0x4e   :  { %1773 = vmatpush3.msra.mxu0 %v140_v9  ;;  %1849 = vmatpush3.msra.mxu1 %v486_v22  ;;  %v126_v53 = vld [vmem:[#allocation2 + $0xc8] sm:$0xff]  ;;  %v127_v54 = vld [vmem:[#allocation2 + $0xd0] sm:$0xff]  ;;  %v128_v55 = vld [vmem:[#allocation2 + $0xd8] sm:$0xff] }
  0x4f   :  { %1774 = vmatprep.subr.mxu0 %v139_v10  ;;  %1850 = vmatprep.subr.mxu1 %v485_v24  ;;  %v129_v56 = vld [vmem:[#allocation2 + $0xe0] sm:$0xff]  ;;  %v130_v57 = vld [vmem:[#allocation2 + $0xe8] sm:$0xff]  ;;  %v131_v58 = vld [vmem:[#allocation2 + $0xf0] sm:$0xff] }
  0x50   :  { %1775 = vmatpush3.msra.mxu0 %v139_v10  ;;  %1851 = vmatpush3.msra.mxu1 %v485_v24  ;;  %v132_v59 = vld [vmem:[#allocation2 + $0xf8] sm:$0xff]  ;;  %v479_v61 = vld [vmem:[#allocation7 + $0x10] sm:$0xff]  ;;  %v478_v62 = vld [vmem:[#allocation7 + $0x8] sm:$0xff] }
  0x51   :  { %1776 = vmatprep.subr.mxu0 %v138_v13  ;;  %1852 = vmatprep.subr.mxu1 %v484_v26  ;;  %v480_v60 = vld [vmem:[#allocation7 + $0x18] sm:$0xff]  ;;  %v477_v63 = vld [vmem:[#allocation7] sm:$0xff]  ;;  %v835_v1 = vld [vmem:[#allocation8 + $0x70] sm:$0xff] }
  0x52   :  { %1777 = vmatpush3.msra.mxu0 %v138_v13  ;;  %1853 = vmatpush3.msra.mxu1 %v484_v26  ;;  %v836_v0 = vld [vmem:[#allocation8 + $0x78] sm:$0xff]  ;;  %v834_v2 = vld [vmem:[#allocation8 + $0x68] sm:$0xff]  ;;  %v833_v3 = vld [vmem:[#allocation8 + $0x60] sm:$0xff] }
  0x53   :  { %1778 = vmatprep.subr.mxu0 %v137_v15  ;;  %1854 = vmatprep.subr.mxu1 %v483_v28  ;;  %v832_v4 = vld [vmem:[#allocation8 + $0x58] sm:$0xff]  ;;  %v831_v5 = vld [vmem:[#allocation8 + $0x50] sm:$0xff]  ;;  %v830_v6 = vld [vmem:[#allocation8 + $0x48] sm:$0xff] }
  0x54   :  { %1779 = vmatpush3.msra.mxu0 %v137_v15  ;;  %1855 = vmatpush3.msra.mxu1 %v483_v28  ;;  %v829_v7 = vld [vmem:[#allocation8 + $0x40] sm:$0xff]  ;;  %v828_v8 = vld [vmem:[#allocation8 + $0x38] sm:$0xff]  ;;  %v827_v9 = vld [vmem:[#allocation8 + $0x30] sm:$0xff] }
  0x55   :  { %1780 = vmatprep.subr.mxu0 %v136_v17  ;;  %1856 = vmatprep.subr.mxu1 %v482_v30  ;;  %v826_v10 = vld [vmem:[#allocation8 + $0x28] sm:$0xff]  ;;  %v825_v11 = vld [vmem:[#allocation8 + $0x20] sm:$0xff]  ;;  %v824_v12 = vld [vmem:[#allocation8 + $0x18] sm:$0xff] }
  0x56   :  { %1781 = vmatpush3.msra.mxu0 %v136_v17  ;;  %1857 = vmatpush3.msra.mxu1 %v482_v30  ;;  %v823_v13 = vld [vmem:[#allocation8 + $0x10] sm:$0xff]  ;;  %v2303_v14 = vld [vmem:[%s2456_s2] ss:$0 sm:$0xff] }
  0x57   :  { %1782 = vmatprep.subr.mxu0 %v135_v19  ;;  %1858 = vmatprep.subr.mxu1 %v481_v32 }
  0x58   :  { %1783 = vmatpush3.msra.mxu0 %v135_v19  ;;  %1859 = vmatpush3.msra.mxu1 %v481_v32 }
  0x59   :  { %1784 = vmatprep.subr.mxu0 %v134_v21  ;;  %1860 = vmatprep.subr.mxu1 %v480_v60 }
  0x5a   :  { %1785 = vmatpush3.msra.mxu0 %v134_v21  ;;  %1861 = vmatpush3.msra.mxu1 %v480_v60 }
  0x5b   :  { %1786 = vmatprep.subr.mxu0 %v133_v23  ;;  %1862 = vmatprep.subr.mxu1 %v479_v61 }
  0x5c   :  { %1787 = vmatpush3.msra.mxu0 %v133_v23  ;;  %1863 = vmatpush3.msra.mxu1 %v479_v61 }
  0x5d   :  { %1789 = vmatmul.mubr.f32.vlgmr.msra.gmra.mxu0 %v102_v25  ;;  %1864 = vmatprep.subr.mxu1 %v478_v62 }
  0x5e   :  { %1791 = vmatprep.mubr.f32.mxu0 %v103_v27  ;;  %1865 = vmatpush3.msra.mxu1 %v478_v62 }
  0x5f   :  { %1866 = vmatprep.subr.mxu1 %v477_v63  ;;  %1916 = vmatprep.subr.mxu0 %v836_v0 }
  0x60   :  { %1867 = vmatpush3.msra.mxu1 %v477_v63  ;;  %1917 = vmatpush3.msra.mxu0 %v836_v0 }
  0x61   :  { %1792 = vmatmul.mubr.f32.gmra.mxu0 %v104_v29  ;;  %1918 = vmatprep.subr.mxu0 %v835_v1 }
  0x62   :  { %1794 = vmatprep.mubr.f32.mxu0 %v105_v31  ;;  %1919 = vmatpush3.msra.mxu0 %v835_v1 }
  0x63   :  { %1920 = vmatprep.subr.mxu0 %v834_v2 }
  0x64   :  { %1921 = vmatpush3.msra.mxu0 %v834_v2 }
  0x65   :  { %1795 = vmatmul.mubr.f32.gmra.mxu0 %v106_v33  ;;  %1922 = vmatprep.subr.mxu0 %v833_v3 }
  0x66   :  { %1797 = vmatprep.mubr.f32.mxu0 %v107_v34  ;;  %1923 = vmatpush3.msra.mxu0 %v833_v3 }
  0x67   :  { %1924 = vmatprep.subr.mxu0 %v832_v4 }
  0x68   :  { %1925 = vmatpush3.msra.mxu0 %v832_v4 }
  0x69   :  { %1798 = vmatmul.mubr.f32.gmra.mxu0 %v108_v35  ;;  %1926 = vmatprep.subr.mxu0 %v831_v5 }
  0x6a   :  { %1800 = vmatprep.mubr.f32.mxu0 %v109_v36  ;;  %1927 = vmatpush3.msra.mxu0 %v831_v5 }
  0x6b   :  { %1928 = vmatprep.subr.mxu0 %v830_v6 }
  0x6c   :  { %1929 = vmatpush3.msra.mxu0 %v830_v6 }
  0x6d   :  { %1801 = vmatmul.mubr.f32.gmra.mxu0 %v110_v37  ;;  %1930 = vmatprep.subr.mxu0 %v829_v7 }
  0x6e   :  { %1803 = vmatprep.mubr.f32.mxu0 %v111_v38  ;;  %1931 = vmatpush3.msra.mxu0 %v829_v7 }
  0x6f   :  { %1932 = vmatprep.subr.mxu0 %v828_v8 }
  0x70   :  { %1933 = vmatpush3.msra.mxu0 %v828_v8 }
  0x71   :  { %1804 = vmatmul.mubr.f32.gmra.mxu0 %v112_v39  ;;  %1934 = vmatprep.subr.mxu0 %v827_v9 }
  0x72   :  { %1806 = vmatprep.mubr.f32.mxu0 %v113_v40  ;;  %1935 = vmatpush3.msra.mxu0 %v827_v9 }
  0x73   :  { %1936 = vmatprep.subr.mxu0 %v826_v10 }
  0x74   :  { %1937 = vmatpush3.msra.mxu0 %v826_v10 }
  0x75   :  { %1807 = vmatmul.mubr.f32.gmra.mxu0 %v114_v41  ;;  %1938 = vmatprep.subr.mxu0 %v825_v11 }
  0x76   :  { %1809 = vmatprep.mubr.f32.mxu0 %v115_v42  ;;  %1939 = vmatpush3.msra.mxu0 %v825_v11 }
  0x77   :  { %1940 = vmatprep.subr.mxu0 %v824_v12 }
  0x78   :  { %1941 = vmatpush3.msra.mxu0 %v824_v12 }
  0x79   :  { %1810 = vmatmul.mubr.f32.gmra.mxu0 %v116_v43  ;;  %1942 = vmatprep.subr.mxu0 %v823_v13 }
  0x7a   :  { %1812 = vmatprep.mubr.f32.mxu0 %v117_v44  ;;  %1943 = vmatpush3.msra.mxu0 %v823_v13 }
  0x7d   :  { %1813 = vmatmul.mubr.f32.gmra.mxu0 %v118_v45 }
  0x7e   :  { %1815 = vmatprep.mubr.f32.mxu0 %v119_v46 }
  0x81   :  { %1816 = vmatmul.mubr.f32.gmra.mxu0 %v120_v47 }
  0x82   :  { %1818 = vmatprep.mubr.f32.mxu0 %v121_v48 }
  0x85   :  { %1819 = vmatmul.mubr.f32.gmra.mxu0 %v122_v49 }
  0x86   :  { %1821 = vmatprep.mubr.f32.mxu0 %v123_v50 }
  0x89   :  { %1822 = vmatmul.mubr.f32.gmra.mxu0 %v124_v51 }
  0x8a   :  { %1824 = vmatprep.mubr.f32.mxu0 %v125_v52 }
  0x8d   :  { %1825 = vmatmul.mubr.f32.gmra.mxu0 %v126_v53 }
  0x8e   :  { %1827 = vmatprep.mubr.f32.mxu0 %v127_v54 }
  0x91   :  { %1828 = vmatmul.mubr.f32.gmra.mxu0 %v128_v55 }
  0x92   :  { %1830 = vmatprep.mubr.f32.mxu0 %v129_v56 }
  0x95   :  { %1831 = vmatmul.mubr.f32.gmra.mxu0 %v130_v57 }
  0x96   :  { %1833 = vmatprep.mubr.f32.mxu0 %v131_v58 }
  0x99   :  { %1834 = vmatmul.mubr.f32.gmra.mxu0 %v132_v59 }
 0x11d   :  { %v1790_v15 = vpop.f32.mrf.mxu0 }
 0x11e   :  { %v228_v16 = vadd.f32 %v1790_v15, %v2303_v14 }
 0x11f   :  { %v222_v17 = vpop.f32.mrf.mxu0 }
 0x120   :  { %v223_v18 = vadd.f32 %v2303_v14, %v222_v17  ;;  %v414_v19 = vmul.f32 0.01, %v228_v16  ;;  %vm382_vm1 = vcmp.gt.f32.partialorder %v228_v16, 0.0 }
 0x121   :  { %v1793_v20 = vpop.f32.mrf.mxu0 }
 0x122   :  { %v238_v21 = vadd.f32 %v1793_v20, %v2303_v14  ;;  %vm381_vm0 = vcmp.gt.f32.partialorder %v223_v18, 0.0  ;;  %v413_v22 = vmul.f32 0.01, %v223_v18  ;;  %v446_v28 = vsel %vm382_vm1, %v228_v16, %v414_v19 }
 0x123   :  { %v232_v23 = vpop.f32.mrf.mxu0 }
 0x124   :  { %v233_v24 = vadd.f32 %v2303_v14, %v232_v23  ;;  %v445_v25 = vsel %vm381_vm0, %v223_v18, %v413_v22  ;;  %v416_v26 = vmul.f32 0.01, %v238_v21  ;;  %vm384_vm3 = vcmp.gt.f32.partialorder %v238_v21, 0.0 }
 0x125   :  { %v1796_v27 = vpop.f32.mrf.mxu0  ;;  %1868 = vmatprep.mubr.f32.mxu1 %v445_v25 }
 0x126   :  { %v415_v29 = vmul.f32 0.01, %v233_v24  ;;  %v248_v30 = vadd.f32 %v1796_v27, %v2303_v14  ;;  %1869 = vmatmul.mubr.f32.vlgmr.msra.gmra.mxu1 %v446_v28  ;;  %vm383_vm2 = vcmp.gt.f32.partialorder %v233_v24, 0.0  ;;  %v448_v36 = vsel %vm384_vm3, %v238_v21, %v416_v26 }
 0x127   :  { %v242_v31 = vpop.f32.mrf.mxu0 }
 0x128   :  { %v243_v32 = vadd.f32 %v2303_v14, %v242_v31  ;;  %v447_v33 = vsel %vm383_vm2, %v233_v24, %v415_v29  ;;  %v418_v34 = vmul.f32 0.01, %v248_v30  ;;  %vm386_vm5 = vcmp.gt.f32.partialorder %v248_v30, 0.0 }
 0x129   :  { %v1799_v35 = vpop.f32.mrf.mxu0  ;;  %1871 = vmatprep.mubr.f32.mxu1 %v447_v33 }
 0x12a   :  { %v417_v37 = vmul.f32 0.01, %v243_v32  ;;  %v258_v38 = vadd.f32 %v1799_v35, %v2303_v14  ;;  %1872 = vmatmul.mubr.f32.gmra.mxu1 %v448_v36  ;;  %vm385_vm4 = vcmp.gt.f32.partialorder %v243_v32, 0.0  ;;  %v450_v44 = vsel %vm386_vm5, %v248_v30, %v418_v34 }
 0x12b   :  { %v252_v39 = vpop.f32.mrf.mxu0 }
 0x12c   :  { %v253_v40 = vadd.f32 %v2303_v14, %v252_v39  ;;  %v449_v41 = vsel %vm385_vm4, %v243_v32, %v417_v37  ;;  %v420_v42 = vmul.f32 0.01, %v258_v38  ;;  %vm388_vm7 = vcmp.gt.f32.partialorder %v258_v38, 0.0 }
 0x12d   :  { %v1802_v43 = vpop.f32.mrf.mxu0  ;;  %1874 = vmatprep.mubr.f32.mxu1 %v449_v41 }
 0x12e   :  { %v419_v45 = vmul.f32 0.01, %v253_v40  ;;  %v268_v46 = vadd.f32 %v1802_v43, %v2303_v14  ;;  %1875 = vmatmul.mubr.f32.gmra.mxu1 %v450_v44  ;;  %vm387_vm6 = vcmp.gt.f32.partialorder %v253_v40, 0.0  ;;  %v452_v52 = vsel %vm388_vm7, %v258_v38, %v420_v42 }
 0x12f   :  { %v262_v47 = vpop.f32.mrf.mxu0 }
 0x130   :  { %v263_v48 = vadd.f32 %v2303_v14, %v262_v47  ;;  %v451_v49 = vsel %vm387_vm6, %v253_v40, %v419_v45  ;;  %v422_v50 = vmul.f32 0.01, %v268_v46  ;;  %vm390_vm9 = vcmp.gt.f32.partialorder %v268_v46, 0.0 }
 0x131   :  { %v1805_v51 = vpop.f32.mrf.mxu0  ;;  %1877 = vmatprep.mubr.f32.mxu1 %v451_v49 }
 0x132   :  { %v421_v53 = vmul.f32 0.01, %v263_v48  ;;  %v278_v54 = vadd.f32 %v1805_v51, %v2303_v14  ;;  %1878 = vmatmul.mubr.f32.gmra.mxu1 %v452_v52  ;;  %vm389_vm8 = vcmp.gt.f32.partialorder %v263_v48, 0.0  ;;  %v454_v60 = vsel %vm390_vm9, %v268_v46, %v422_v50 }
 0x133   :  { %v272_v55 = vpop.f32.mrf.mxu0 }
 0x134   :  { %v273_v56 = vadd.f32 %v2303_v14, %v272_v55  ;;  %v453_v57 = vsel %vm389_vm8, %v263_v48, %v421_v53  ;;  %v424_v58 = vmul.f32 0.01, %v278_v54  ;;  %vm392_vm11 = vcmp.gt.f32.partialorder %v278_v54, 0.0 }
 0x135   :  { %v1808_v59 = vpop.f32.mrf.mxu0  ;;  %1880 = vmatprep.mubr.f32.mxu1 %v453_v57 }
 0x136   :  { %v423_v61 = vmul.f32 0.01, %v273_v56  ;;  %v288_v62 = vadd.f32 %v1808_v59, %v2303_v14  ;;  %1881 = vmatmul.mubr.f32.gmra.mxu1 %v454_v60  ;;  %vm391_vm10 = vcmp.gt.f32.partialorder %v273_v56, 0.0  ;;  %v456_v4 = vsel %vm392_vm11, %v278_v54, %v424_v58 }
 0x137   :  { %v282_v63 = vpop.f32.mrf.mxu0 }
 0x138   :  { %v283_v0 = vadd.f32 %v2303_v14, %v282_v63  ;;  %v455_v1 = vsel %vm391_vm10, %v273_v56, %v423_v61  ;;  %v426_v2 = vmul.f32 0.01, %v288_v62  ;;  %vm394_vm13 = vcmp.gt.f32.partialorder %v288_v62, 0.0 }
 0x139   :  { %v1811_v3 = vpop.f32.mrf.mxu0  ;;  %1883 = vmatprep.mubr.f32.mxu1 %v455_v1 }
 0x13a   :  { %v425_v5 = vmul.f32 0.01, %v283_v0  ;;  %v298_v6 = vadd.f32 %v1811_v3, %v2303_v14  ;;  %1884 = vmatmul.mubr.f32.gmra.mxu1 %v456_v4  ;;  %vm393_vm12 = vcmp.gt.f32.partialorder %v283_v0, 0.0  ;;  %v458_v12 = vsel %vm394_vm13, %v288_v62, %v426_v2 }
 0x13b   :  { %v292_v7 = vpop.f32.mrf.mxu0 }
 0x13c   :  { %v293_v8 = vadd.f32 %v2303_v14, %v292_v7  ;;  %v457_v9 = vsel %vm393_vm12, %v283_v0, %v425_v5  ;;  %v428_v10 = vmul.f32 0.01, %v298_v6  ;;  %vm396_vm15 = vcmp.gt.f32.partialorder %v298_v6, 0.0 }
 0x13d   :  { %v1814_v11 = vpop.f32.mrf.mxu0  ;;  %1886 = vmatprep.mubr.f32.mxu1 %v457_v9 }
 0x13e   :  { %v427_v13 = vmul.f32 0.01, %v293_v8  ;;  %v308_v15 = vadd.f32 %v1814_v11, %v2303_v14  ;;  %1887 = vmatmul.mubr.f32.gmra.mxu1 %v458_v12  ;;  %vm395_vm14 = vcmp.gt.f32.partialorder %v293_v8, 0.0  ;;  %v460_v21 = vsel %vm396_vm15, %v298_v6, %v428_v10 }
 0x13f   :  { %v302_v16 = vpop.f32.mrf.mxu0 }
 0x140   :  { %v303_v17 = vadd.f32 %v2303_v14, %v302_v16  ;;  %v459_v18 = vsel %vm395_vm14, %v293_v8, %v427_v13  ;;  %v430_v19 = vmul.f32 0.01, %v308_v15  ;;  %vm398_vm1 = vcmp.gt.f32.partialorder %v308_v15, 0.0 }
 0x141   :  { %v1817_v20 = vpop.f32.mrf.mxu0  ;;  %1889 = vmatprep.mubr.f32.mxu1 %v459_v18  ;;  %v821_v18 = vld [vmem:[#allocation8] sm:$0xff] }
 0x142   :  { %v429_v22 = vmul.f32 0.01, %v303_v17  ;;  %v318_v23 = vadd.f32 %v1817_v20, %v2303_v14  ;;  %1890 = vmatmul.mubr.f32.gmra.mxu1 %v460_v21  ;;  %vm397_vm0 = vcmp.gt.f32.partialorder %v303_v17, 0.0  ;;  %v462_v29 = vsel %vm398_vm1, %v308_v15, %v430_v19  ;;  %v1180_v19 = vld [vmem:[#allocation10 + $0x78] sm:$0xff]  ;;  %v1178_v20 = vld [vmem:[#allocation10 + $0x68] sm:$0xff]  ;;  %v1177_v21 = vld [vmem:[#allocation10 + $0x60] sm:$0xff] }
 0x143   :  { %v312_v24 = vpop.f32.mrf.mxu0  ;;  %1996 = vmatprep.subr.mxu1 %v1180_v19 }
 0x144   :  { %v313_v25 = vadd.f32 %v2303_v14, %v312_v24  ;;  %v461_v26 = vsel %vm397_vm0, %v303_v17, %v429_v22  ;;  %v432_v27 = vmul.f32 0.01, %v318_v23  ;;  %vm400_vm3 = vcmp.gt.f32.partialorder %v318_v23, 0.0  ;;  %v822_v17 = vld [vmem:[#allocation8 + $0x8] sm:$0xff]  ;;  %1997 = vmatpush3.msra.mxu1 %v1180_v19  ;;  %v1176_v22 = vld [vmem:[#allocation10 + $0x58] sm:$0xff] }
 0x145   :  { %v1820_v28 = vpop.f32.mrf.mxu0  ;;  %1892 = vmatprep.mubr.f32.mxu1 %v461_v26  ;;  %1944 = vmatprep.subr.mxu0 %v822_v17  ;;  %v1174_v24 = vld [vmem:[#allocation10 + $0x48] sm:$0xff]  ;;  %v1172_v26 = vld [vmem:[#allocation10 + $0x38] sm:$0xff] }
 0x146   :  { %v431_v30 = vmul.f32 0.01, %v313_v25  ;;  %v328_v31 = vadd.f32 %v1820_v28, %v2303_v14  ;;  %1893 = vmatmul.mubr.f32.gmra.mxu1 %v462_v29  ;;  %vm399_vm2 = vcmp.gt.f32.partialorder %v313_v25, 0.0  ;;  %v464_v37 = vsel %vm400_vm3, %v318_v23, %v432_v27  ;;  %1945 = vmatpush3.msra.mxu0 %v822_v17  ;;  %v1175_v23 = vld [vmem:[#allocation10 + $0x50] sm:$0xff]  ;;  %v1170_v28 = vld [vmem:[#allocation10 + $0x28] sm:$0xff]  ;;  %v1169_v29 = vld [vmem:[#allocation10 + $0x20] sm:$0xff] }
 0x147   :  { %v322_v32 = vpop.f32.mrf.mxu0  ;;  %1946 = vmatprep.subr.mxu0 %v821_v18  ;;  %v1171_v27 = vld [vmem:[#allocation10 + $0x30] sm:$0xff] }
 0x148   :  { %v323_v33 = vadd.f32 %v2303_v14, %v322_v32  ;;  %v463_v34 = vsel %vm399_vm2, %v313_v25, %v431_v30  ;;  %v434_v35 = vmul.f32 0.01, %v328_v31  ;;  %vm402_vm5 = vcmp.gt.f32.partialorder %v328_v31, 0.0  ;;  %1947 = vmatpush3.msra.mxu0 %v821_v18  ;;  %v1173_v25 = vld [vmem:[#allocation10 + $0x40] sm:$0xff]  ;;  %v1168_v30 = vld [vmem:[#allocation10 + $0x18] sm:$0xff] }
 0x149   :  { %v1823_v36 = vpop.f32.mrf.mxu0  ;;  %1895 = vmatprep.mubr.f32.mxu1 %v463_v34  ;;  %v2340_v32 = vld [vmem:[%s2458_s4] ss:$0 sm:$0xff] }
 0x14a   :  { %v433_v38 = vmul.f32 0.01, %v323_v33  ;;  %v338_v39 = vadd.f32 %v1823_v36, %v2303_v14  ;;  %1896 = vmatmul.mubr.f32.gmra.mxu1 %v464_v37  ;;  %vm401_vm4 = vcmp.gt.f32.partialorder %v323_v33, 0.0  ;;  %v466_v45 = vsel %vm402_vm5, %v328_v31, %v434_v35  ;;  %v1167_v31 = vld [vmem:[#allocation10 + $0x10] sm:$0xff] }
 0x14b   :  { %v332_v40 = vpop.f32.mrf.mxu0 }
 0x14c   :  { %v333_v41 = vadd.f32 %v2303_v14, %v332_v40  ;;  %v465_v42 = vsel %vm401_vm4, %v323_v33, %v433_v38  ;;  %v436_v43 = vmul.f32 0.01, %v338_v39  ;;  %vm404_vm7 = vcmp.gt.f32.partialorder %v338_v39, 0.0 }
 0x14d   :  { %v1826_v44 = vpop.f32.mrf.mxu0  ;;  %1898 = vmatprep.mubr.f32.mxu1 %v465_v42 }
 0x14e   :  { %v435_v46 = vmul.f32 0.01, %v333_v41  ;;  %v348_v47 = vadd.f32 %v1826_v44, %v2303_v14  ;;  %1899 = vmatmul.mubr.f32.gmra.mxu1 %v466_v45  ;;  %vm403_vm6 = vcmp.gt.f32.partialorder %v333_v41, 0.0  ;;  %v468_v53 = vsel %vm404_vm7, %v338_v39, %v436_v43 }
 0x14f   :  { %v342_v48 = vpop.f32.mrf.mxu0 }
 0x150   :  { %v343_v49 = vadd.f32 %v2303_v14, %v342_v48  ;;  %v467_v50 = vsel %vm403_vm6, %v333_v41, %v435_v46  ;;  %v438_v51 = vmul.f32 0.01, %v348_v47  ;;  %vm406_vm9 = vcmp.gt.f32.partialorder %v348_v47, 0.0 }
 0x151   :  { %v1829_v52 = vpop.f32.mrf.mxu0  ;;  %1901 = vmatprep.mubr.f32.mxu1 %v467_v50 }
 0x152   :  { %v437_v54 = vmul.f32 0.01, %v343_v49  ;;  %v358_v55 = vadd.f32 %v1829_v52, %v2303_v14  ;;  %1902 = vmatmul.mubr.f32.gmra.mxu1 %v468_v53  ;;  %vm405_vm8 = vcmp.gt.f32.partialorder %v343_v49, 0.0  ;;  %v470_v61 = vsel %vm406_vm9, %v348_v47, %v438_v51 }
 0x153   :  { %v352_v56 = vpop.f32.mrf.mxu0 }
 0x154   :  { %v353_v57 = vadd.f32 %v2303_v14, %v352_v56  ;;  %v469_v58 = vsel %vm405_vm8, %v343_v49, %v437_v54  ;;  %v440_v59 = vmul.f32 0.01, %v358_v55  ;;  %vm408_vm11 = vcmp.gt.f32.partialorder %v358_v55, 0.0 }
 0x155   :  { %v1832_v60 = vpop.f32.mrf.mxu0  ;;  %1904 = vmatprep.mubr.f32.mxu1 %v469_v58 }
 0x156   :  { %v439_v62 = vmul.f32 0.01, %v353_v57  ;;  %v368_v63 = vadd.f32 %v1832_v60, %v2303_v14  ;;  %1905 = vmatmul.mubr.f32.gmra.mxu1 %v470_v61  ;;  %vm407_vm10 = vcmp.gt.f32.partialorder %v353_v57, 0.0  ;;  %v472_v5 = vsel %vm408_vm11, %v358_v55, %v440_v59 }
 0x157   :  { %v362_v0 = vpop.f32.mrf.mxu0 }
 0x158   :  { %v363_v1 = vadd.f32 %v2303_v14, %v362_v0  ;;  %v471_v2 = vsel %vm407_vm10, %v353_v57, %v439_v62  ;;  %v442_v3 = vmul.f32 0.01, %v368_v63  ;;  %vm410_vm13 = vcmp.gt.f32.partialorder %v368_v63, 0.0 }
 0x159   :  { %v1835_v4 = vpop.f32.mrf.mxu0  ;;  %1907 = vmatprep.mubr.f32.mxu1 %v471_v2 }
 0x15a   :  { %v441_v6 = vmul.f32 0.01, %v363_v1  ;;  %v378_v7 = vadd.f32 %v1835_v4, %v2303_v14  ;;  %1908 = vmatmul.mubr.f32.gmra.mxu1 %v472_v5  ;;  %vm409_vm12 = vcmp.gt.f32.partialorder %v363_v1, 0.0  ;;  %v474_v12 = vsel %vm410_vm13, %v368_v63, %v442_v3 }
 0x15b   :  { %v372_v8 = vpop.f32.mrf.mxu0 }
 0x15c   :  { %v373_v9 = vadd.f32 %v2303_v14, %v372_v8  ;;  %v473_v10 = vsel %vm409_vm12, %v363_v1, %v441_v6  ;;  %v444_v11 = vmul.f32 0.01, %v378_v7  ;;  %vm412_vm15 = vcmp.gt.f32.partialorder %v378_v7, 0.0  ;;  %v1179_v14 = vld [vmem:[#allocation10 + $0x70] sm:$0xff] }
 0x15d   :  { %1910 = vmatprep.mubr.f32.mxu1 %v473_v10  ;;  %1998 = vmatprep.subr.mxu1 %v1179_v14 }
 0x15e   :  { %v443_v13 = vmul.f32 0.01, %v373_v9  ;;  %1911 = vmatmul.mubr.f32.gmra.mxu1 %v474_v12  ;;  %vm411_vm14 = vcmp.gt.f32.partialorder %v373_v9, 0.0  ;;  %v476_v16 = vsel %vm412_vm15, %v378_v7, %v444_v11 }
 0x15f   :  { %1999 = vmatpush3.msra.mxu1 %v1179_v14 }
 0x160   :  { %v475_v15 = vsel %vm411_vm14, %v373_v9, %v443_v13  ;;  %2000 = vmatprep.subr.mxu1 %v1178_v20 }
 0x161   :  { %1913 = vmatprep.mubr.f32.mxu1 %v475_v15  ;;  %2001 = vmatpush3.msra.mxu1 %v1178_v20 }
 0x162   :  { %1914 = vmatmul.mubr.f32.gmra.mxu1 %v476_v16  ;;  %2002 = vmatprep.subr.mxu1 %v1177_v21 }
 0x163   :  { %2003 = vmatpush3.msra.mxu1 %v1177_v21 }
 0x164   :  { %2004 = vmatprep.subr.mxu1 %v1176_v22 }
 0x165   :  { %2005 = vmatpush3.msra.mxu1 %v1176_v22 }
 0x166   :  { %2006 = vmatprep.subr.mxu1 %v1175_v23 }
 0x167   :  { %2007 = vmatpush3.msra.mxu1 %v1175_v23 }
 0x168   :  { %2008 = vmatprep.subr.mxu1 %v1174_v24 }
 0x169   :  { %2009 = vmatpush3.msra.mxu1 %v1174_v24 }
 0x16a   :  { %2010 = vmatprep.subr.mxu1 %v1173_v25 }
 0x16b   :  { %2011 = vmatpush3.msra.mxu1 %v1173_v25 }
 0x16c   :  { %2012 = vmatprep.subr.mxu1 %v1172_v26 }
 0x16d   :  { %2013 = vmatpush3.msra.mxu1 %v1172_v26 }
 0x16e   :  { %2014 = vmatprep.subr.mxu1 %v1171_v27 }
 0x16f   :  { %2015 = vmatpush3.msra.mxu1 %v1171_v27 }
 0x170   :  { %2016 = vmatprep.subr.mxu1 %v1170_v28 }
 0x171   :  { %2017 = vmatpush3.msra.mxu1 %v1170_v28 }
 0x172   :  { %2018 = vmatprep.subr.mxu1 %v1169_v29 }
 0x173   :  { %2019 = vmatpush3.msra.mxu1 %v1169_v29 }
 0x174   :  { %2020 = vmatprep.subr.mxu1 %v1168_v30 }
 0x175   :  { %2021 = vmatpush3.msra.mxu1 %v1168_v30 }
 0x176   :  { %2022 = vmatprep.subr.mxu1 %v1167_v31 }
 0x177   :  { %2023 = vmatpush3.msra.mxu1 %v1167_v31 }
 0x1e6   :  { %v1870_v33 = vpop.f32.mrf.mxu1 }
 0x1e7   :  { %v572_v34 = vadd.f32 %v1870_v33, %v2340_v32 }
 0x1e8   :  { %v566_v35 = vpop.f32.mrf.mxu1 }
 0x1e9   :  { %v567_v36 = vadd.f32 %v2340_v32, %v566_v35  ;;  %v758_v37 = vmul.f32 0.01, %v572_v34  ;;  %vm726_vm0 = vcmp.gt.f32.partialorder %v572_v34, 0.0 }
 0x1ea   :  { %v1873_v38 = vpop.f32.mrf.mxu1 }
 0x1eb   :  { %v757_v39 = vmul.f32 0.01, %v567_v36  ;;  %v582_v40 = vadd.f32 %v1873_v38, %v2340_v32  ;;  %vm725_vm1 = vcmp.gt.f32.partialorder %v567_v36, 0.0  ;;  %v790_v44 = vsel %vm726_vm0, %v572_v34, %v758_v37 }
 0x1ec   :  { %v576_v41 = vpop.f32.mrf.mxu1 }
 0x1ed   :  { %v577_v42 = vadd.f32 %v2340_v32, %v576_v41  ;;  %v789_v43 = vsel %vm725_vm1, %v567_v36, %v757_v39  ;;  %v760_v45 = vmul.f32 0.01, %v582_v40  ;;  %vm728_vm3 = vcmp.gt.f32.partialorder %v582_v40, 0.0 }
 0x1ee   :  { %v1876_v46 = vpop.f32.mrf.mxu1  ;;  %1948 = vmatprep.mubr.f32.mxu0 %v789_v43 }
 0x1ef   :  { %v759_v47 = vmul.f32 0.01, %v577_v42  ;;  %v592_v48 = vadd.f32 %v1876_v46, %v2340_v32  ;;  %1949 = vmatmul.mubr.f32.vlgmr.msra.gmra.mxu0 %v790_v44  ;;  %vm727_vm2 = vcmp.gt.f32.partialorder %v577_v42, 0.0  ;;  %v792_v54 = vsel %vm728_vm3, %v582_v40, %v760_v45 }
 0x1f0   :  { %v586_v49 = vpop.f32.mrf.mxu1 }
 0x1f1   :  { %v587_v50 = vadd.f32 %v2340_v32, %v586_v49  ;;  %v791_v51 = vsel %vm727_vm2, %v577_v42, %v759_v47  ;;  %v762_v52 = vmul.f32 0.01, %v592_v48  ;;  %vm730_vm5 = vcmp.gt.f32.partialorder %v592_v48, 0.0 }
 0x1f2   :  { %v1879_v53 = vpop.f32.mrf.mxu1  ;;  %1951 = vmatprep.mubr.f32.mxu0 %v791_v51 }
 0x1f3   :  { %v761_v55 = vmul.f32 0.01, %v587_v50  ;;  %v602_v56 = vadd.f32 %v1879_v53, %v2340_v32  ;;  %1952 = vmatmul.mubr.f32.gmra.mxu0 %v792_v54  ;;  %vm729_vm4 = vcmp.gt.f32.partialorder %v587_v50, 0.0  ;;  %v794_v62 = vsel %vm730_vm5, %v592_v48, %v762_v52 }
 0x1f4   :  { %v596_v57 = vpop.f32.mrf.mxu1 }
 0x1f5   :  { %v597_v58 = vadd.f32 %v2340_v32, %v596_v57  ;;  %v793_v59 = vsel %vm729_vm4, %v587_v50, %v761_v55  ;;  %v764_v60 = vmul.f32 0.01, %v602_v56  ;;  %vm732_vm7 = vcmp.gt.f32.partialorder %v602_v56, 0.0 }
 0x1f6   :  { %v1882_v61 = vpop.f32.mrf.mxu1  ;;  %1954 = vmatprep.mubr.f32.mxu0 %v793_v59 }
 0x1f7   :  { %v763_v63 = vmul.f32 0.01, %v597_v58  ;;  %v612_v0 = vadd.f32 %v1882_v61, %v2340_v32  ;;  %1955 = vmatmul.mubr.f32.gmra.mxu0 %v794_v62  ;;  %vm731_vm6 = vcmp.gt.f32.partialorder %v597_v58, 0.0  ;;  %v796_v6 = vsel %vm732_vm7, %v602_v56, %v764_v60 }
 0x1f8   :  { %v606_v1 = vpop.f32.mrf.mxu1 }
 0x1f9   :  { %v607_v2 = vadd.f32 %v2340_v32, %v606_v1  ;;  %v795_v3 = vsel %vm731_vm6, %v597_v58, %v763_v63  ;;  %v766_v4 = vmul.f32 0.01, %v612_v0  ;;  %vm734_vm9 = vcmp.gt.f32.partialorder %v612_v0, 0.0 }
 0x1fa   :  { %v1885_v5 = vpop.f32.mrf.mxu1  ;;  %1957 = vmatprep.mubr.f32.mxu0 %v795_v3 }
 0x1fb   :  { %v765_v7 = vmul.f32 0.01, %v607_v2  ;;  %v622_v8 = vadd.f32 %v1885_v5, %v2340_v32  ;;  %1958 = vmatmul.mubr.f32.gmra.mxu0 %v796_v6  ;;  %vm733_vm8 = vcmp.gt.f32.partialorder %v607_v2, 0.0  ;;  %v798_v15 = vsel %vm734_vm9, %v612_v0, %v766_v4 }
 0x1fc   :  { %v616_v9 = vpop.f32.mrf.mxu1 }
 0x1fd   :  { %v617_v10 = vadd.f32 %v2340_v32, %v616_v9  ;;  %v797_v11 = vsel %vm733_vm8, %v607_v2, %v765_v7  ;;  %v768_v12 = vmul.f32 0.01, %v622_v8  ;;  %vm736_vm11 = vcmp.gt.f32.partialorder %v622_v8, 0.0 }
 0x1fe   :  { %v1888_v13 = vpop.f32.mrf.mxu1  ;;  %1960 = vmatprep.mubr.f32.mxu0 %v797_v11 }
 0x1ff   :  { %v767_v16 = vmul.f32 0.01, %v617_v10  ;;  %v632_v17 = vadd.f32 %v1888_v13, %v2340_v32  ;;  %1961 = vmatmul.mubr.f32.gmra.mxu0 %v798_v15  ;;  %vm735_vm10 = vcmp.gt.f32.partialorder %v617_v10, 0.0  ;;  %v800_v22 = vsel %vm736_vm11, %v622_v8, %v768_v12 }
 0x200   :  { %v626_v18 = vpop.f32.mrf.mxu1 }
 0x201   :  { %v627_v19 = vadd.f32 %v2340_v32, %v626_v18  ;;  %v799_v14 = vsel %vm735_vm10, %v617_v10, %v767_v16  ;;  %v770_v20 = vmul.f32 0.01, %v632_v17  ;;  %vm738_vm13 = vcmp.gt.f32.partialorder %v632_v17, 0.0 }
 0x202   :  { %v1891_v21 = vpop.f32.mrf.mxu1  ;;  %1963 = vmatprep.mubr.f32.mxu0 %v799_v14 }
 0x203   :  { %v769_v23 = vmul.f32 0.01, %v627_v19  ;;  %v642_v24 = vadd.f32 %v1891_v21, %v2340_v32  ;;  %1964 = vmatmul.mubr.f32.gmra.mxu0 %v800_v22  ;;  %vm737_vm12 = vcmp.gt.f32.partialorder %v627_v19, 0.0  ;;  %v802_v30 = vsel %vm738_vm13, %v632_v17, %v770_v20 }
 0x204   :  { %v636_v25 = vpop.f32.mrf.mxu1 }
 0x205   :  { %v637_v26 = vadd.f32 %v2340_v32, %v636_v25  ;;  %v801_v27 = vsel %vm737_vm12, %v627_v19, %v769_v23  ;;  %v772_v28 = vmul.f32 0.01, %v642_v24  ;;  %vm740_vm15 = vcmp.gt.f32.partialorder %v642_v24, 0.0 }
 0x206   :  { %v1894_v29 = vpop.f32.mrf.mxu1  ;;  %1966 = vmatprep.mubr.f32.mxu0 %v801_v27 }
 0x207   :  { %v771_v31 = vmul.f32 0.01, %v637_v26  ;;  %v652_v33 = vadd.f32 %v1894_v29, %v2340_v32  ;;  %1967 = vmatmul.mubr.f32.gmra.mxu0 %v802_v30  ;;  %vm739_vm14 = vcmp.gt.f32.partialorder %v637_v26, 0.0  ;;  %v804_v39 = vsel %vm740_vm15, %v642_v24, %v772_v28 }
 0x208   :  { %v646_v34 = vpop.f32.mrf.mxu1 }
 0x209   :  { %v647_v35 = vadd.f32 %v2340_v32, %v646_v34  ;;  %v803_v36 = vsel %vm739_vm14, %v637_v26, %v771_v31  ;;  %v774_v37 = vmul.f32 0.01, %v652_v33  ;;  %vm742_vm1 = vcmp.gt.f32.partialorder %v652_v33, 0.0 }
 0x20a   :  { %v1897_v38 = vpop.f32.mrf.mxu1  ;;  %1969 = vmatprep.mubr.f32.mxu0 %v803_v36  ;;  %v1165_v36 = vld [vmem:[#allocation10] sm:$0xff] }
 0x20b   :  { %v773_v40 = vmul.f32 0.01, %v647_v35  ;;  %v662_v41 = vadd.f32 %v1897_v38, %v2340_v32  ;;  %1970 = vmatmul.mubr.f32.gmra.mxu0 %v804_v39  ;;  %vm741_vm0 = vcmp.gt.f32.partialorder %v647_v35, 0.0  ;;  %v806_v47 = vsel %vm742_vm1, %v652_v33, %v774_v37 }
 0x20c   :  { %v656_v42 = vpop.f32.mrf.mxu1 }
 0x20d   :  { %v657_v43 = vadd.f32 %v2340_v32, %v656_v42  ;;  %v805_v44 = vsel %vm741_vm0, %v647_v35, %v773_v40  ;;  %v776_v45 = vmul.f32 0.01, %v662_v41  ;;  %vm744_vm3 = vcmp.gt.f32.partialorder %v662_v41, 0.0  ;;  %v1166_v35 = vld [vmem:[#allocation10 + $0x8] sm:$0xff] }
 0x20e   :  { %v1900_v46 = vpop.f32.mrf.mxu1  ;;  %1972 = vmatprep.mubr.f32.mxu0 %v805_v44  ;;  %2024 = vmatprep.subr.mxu1 %v1166_v35 }
 0x20f   :  { %v775_v48 = vmul.f32 0.01, %v657_v43  ;;  %v672_v49 = vadd.f32 %v1900_v46, %v2340_v32  ;;  %1973 = vmatmul.mubr.f32.gmra.mxu0 %v806_v47  ;;  %vm743_vm2 = vcmp.gt.f32.partialorder %v657_v43, 0.0  ;;  %v808_v55 = vsel %vm744_vm3, %v662_v41, %v776_v45  ;;  %2025 = vmatpush3.msra.mxu1 %v1166_v35 }
 0x210   :  { %v666_v50 = vpop.f32.mrf.mxu1  ;;  %2026 = vmatprep.subr.mxu1 %v1165_v36 }
 0x211   :  { %v667_v51 = vadd.f32 %v2340_v32, %v666_v50  ;;  %v807_v52 = vsel %vm743_vm2, %v657_v43, %v775_v48  ;;  %v778_v53 = vmul.f32 0.01, %v672_v49  ;;  %vm746_vm5 = vcmp.gt.f32.partialorder %v672_v49, 0.0  ;;  %2027 = vmatpush3.msra.mxu1 %v1165_v36 }
 0x212   :  { %v1903_v54 = vpop.f32.mrf.mxu1  ;;  %1975 = vmatprep.mubr.f32.mxu0 %v807_v52 }
 0x213   :  { %v777_v56 = vmul.f32 0.01, %v667_v51  ;;  %v682_v57 = vadd.f32 %v1903_v54, %v2340_v32  ;;  %1976 = vmatmul.mubr.f32.gmra.mxu0 %v808_v55  ;;  %vm745_vm4 = vcmp.gt.f32.partialorder %v667_v51, 0.0  ;;  %v810_v63 = vsel %vm746_vm5, %v672_v49, %v778_v53 }
 0x214   :  { %v676_v58 = vpop.f32.mrf.mxu1 }
 0x215   :  { %v677_v59 = vadd.f32 %v2340_v32, %v676_v58  ;;  %v809_v60 = vsel %vm745_vm4, %v667_v51, %v777_v56  ;;  %v780_v61 = vmul.f32 0.01, %v682_v57  ;;  %vm748_vm7 = vcmp.gt.f32.partialorder %v682_v57, 0.0 }
 0x216   :  { %v1906_v62 = vpop.f32.mrf.mxu1  ;;  %1978 = vmatprep.mubr.f32.mxu0 %v809_v60 }
 0x217   :  { %v779_v0 = vmul.f32 0.01, %v677_v59  ;;  %v692_v1 = vadd.f32 %v1906_v62, %v2340_v32  ;;  %1979 = vmatmul.mubr.f32.gmra.mxu0 %v810_v63  ;;  %vm747_vm6 = vcmp.gt.f32.partialorder %v677_v59, 0.0  ;;  %v812_v7 = vsel %vm748_vm7, %v682_v57, %v780_v61 }
 0x218   :  { %v686_v2 = vpop.f32.mrf.mxu1 }
 0x219   :  { %v687_v3 = vadd.f32 %v2340_v32, %v686_v2  ;;  %v811_v4 = vsel %vm747_vm6, %v677_v59, %v779_v0  ;;  %v782_v5 = vmul.f32 0.01, %v692_v1  ;;  %vm750_vm9 = vcmp.gt.f32.partialorder %v692_v1, 0.0 }
 0x21a   :  { %v1909_v6 = vpop.f32.mrf.mxu1  ;;  %1981 = vmatprep.mubr.f32.mxu0 %v811_v4 }
 0x21b   :  { %v781_v8 = vmul.f32 0.01, %v687_v3  ;;  %v702_v9 = vadd.f32 %v1909_v6, %v2340_v32  ;;  %1982 = vmatmul.mubr.f32.gmra.mxu0 %v812_v7  ;;  %vm749_vm8 = vcmp.gt.f32.partialorder %v687_v3, 0.0  ;;  %v814_v16 = vsel %vm750_vm9, %v692_v1, %v782_v5 }
 0x21c   :  { %v696_v10 = vpop.f32.mrf.mxu1 }
 0x21d   :  { %v697_v11 = vadd.f32 %v2340_v32, %v696_v10  ;;  %v813_v12 = vsel %vm749_vm8, %v687_v3, %v781_v8  ;;  %v784_v13 = vmul.f32 0.01, %v702_v9  ;;  %vm752_vm11 = vcmp.gt.f32.partialorder %v702_v9, 0.0 }
 0x21e   :  { %v1912_v15 = vpop.f32.mrf.mxu1  ;;  %1984 = vmatprep.mubr.f32.mxu0 %v813_v12 }
 0x21f   :  { %v783_v17 = vmul.f32 0.01, %v697_v11  ;;  %v712_v18 = vadd.f32 %v1912_v15, %v2340_v32  ;;  %1985 = vmatmul.mubr.f32.gmra.mxu0 %v814_v16  ;;  %vm751_vm10 = vcmp.gt.f32.partialorder %v697_v11, 0.0  ;;  %v816_v23 = vsel %vm752_vm11, %v702_v9, %v784_v13 }
 0x220   :  { %v706_v19 = vpop.f32.mrf.mxu1 }
 0x221   :  { %v707_v14 = vadd.f32 %v2340_v32, %v706_v19  ;;  %v815_v20 = vsel %vm751_vm10, %v697_v11, %v783_v17  ;;  %v786_v21 = vmul.f32 0.01, %v712_v18  ;;  %vm754_vm13 = vcmp.gt.f32.partialorder %v712_v18, 0.0 }
 0x222   :  { %v1915_v22 = vpop.f32.mrf.mxu1  ;;  %1987 = vmatprep.mubr.f32.mxu0 %v815_v20 }
 0x223   :  { %v785_v24 = vmul.f32 0.01, %v707_v14  ;;  %v722_v25 = vadd.f32 %v1915_v22, %v2340_v32  ;;  %1988 = vmatmul.mubr.f32.gmra.mxu0 %v816_v23  ;;  %vm753_vm12 = vcmp.gt.f32.partialorder %v707_v14, 0.0  ;;  %v818_v30 = vsel %vm754_vm13, %v712_v18, %v786_v21 }
 0x224   :  { %v716_v26 = vpop.f32.mrf.mxu1 }
 0x225   :  { %v717_v27 = vadd.f32 %v2340_v32, %v716_v26  ;;  %v817_v28 = vsel %vm753_vm12, %v707_v14, %v785_v24  ;;  %v788_v29 = vmul.f32 0.01, %v722_v25  ;;  %vm756_vm15 = vcmp.gt.f32.partialorder %v722_v25, 0.0  ;;  %v2377_v32 = vld [vmem:[%s2460_s6] ss:$0 sm:$0xff] }
 0x226   :  { %1990 = vmatprep.mubr.f32.mxu0 %v817_v28 }
 0x227   :  { %v787_v31 = vmul.f32 0.01, %v717_v27  ;;  %1991 = vmatmul.mubr.f32.gmra.mxu0 %v818_v30  ;;  %vm755_vm14 = vcmp.gt.f32.partialorder %v717_v27, 0.0  ;;  %v820_v34 = vsel %vm756_vm15, %v722_v25, %v788_v29 }
 0x229   :  { %v819_v33 = vsel %vm755_vm14, %v717_v27, %v787_v31 }
 0x22a   :  { %1993 = vmatprep.mubr.f32.mxu0 %v819_v33 }
 0x22b   :  { %1994 = vmatmul.mubr.f32.gmra.mxu0 %v820_v34 }
 0x2af   :  { %v1950_v37 = vpop.f32.mrf.mxu0 }
 0x2b0   :  { %v916_v38 = vadd.f32 %v1950_v37, %v2377_v32 }
 0x2b1   :  { %v910_v39 = vpop.f32.mrf.mxu0 }
 0x2b2   :  { %v911_v40 = vadd.f32 %v2377_v32, %v910_v39  ;;  %v1102_v41 = vmul.f32 0.01, %v916_v38  ;;  %vm1070_vm0 = vcmp.gt.f32.partialorder %v916_v38, 0.0 }
 0x2b3   :  { %v1953_v42 = vpop.f32.mrf.mxu0 }
 0x2b4   :  { %v1101_v43 = vmul.f32 0.01, %v911_v40  ;;  %v926_v44 = vadd.f32 %v1953_v42, %v2377_v32  ;;  %vm1069_vm1 = vcmp.gt.f32.partialorder %v911_v40, 0.0  ;;  %v1134_v48 = vsel %vm1070_vm0, %v916_v38, %v1102_v41 }
 0x2b5   :  { %v920_v45 = vpop.f32.mrf.mxu0 }
 0x2b6   :  { %v921_v46 = vadd.f32 %v2377_v32, %v920_v45  ;;  %v1133_v47 = vsel %vm1069_vm1, %v911_v40, %v1101_v43  ;;  %v1104_v49 = vmul.f32 0.01, %v926_v44  ;;  %vm1072_vm3 = vcmp.gt.f32.partialorder %v926_v44, 0.0 }
 0x2b7   :  { %v1956_v50 = vpop.f32.mrf.mxu0  ;;  %2028 = vmatprep.mubr.f32.mxu1 %v1133_v47 }
 0x2b8   :  { %v1103_v51 = vmul.f32 0.01, %v921_v46  ;;  %v936_v52 = vadd.f32 %v1956_v50, %v2377_v32  ;;  %2029 = vmatmul.mubr.f32.vlgmr.msra.gmra.mxu1 %v1134_v48  ;;  %vm1071_vm2 = vcmp.gt.f32.partialorder %v921_v46, 0.0  ;;  %v1136_v58 = vsel %vm1072_vm3, %v926_v44, %v1104_v49 }
 0x2b9   :  { %v930_v53 = vpop.f32.mrf.mxu0 }
 0x2ba   :  { %v931_v54 = vadd.f32 %v2377_v32, %v930_v53  ;;  %v1135_v55 = vsel %vm1071_vm2, %v921_v46, %v1103_v51  ;;  %v1106_v56 = vmul.f32 0.01, %v936_v52  ;;  %vm1074_vm5 = vcmp.gt.f32.partialorder %v936_v52, 0.0 }
 0x2bb   :  { %v1959_v57 = vpop.f32.mrf.mxu0  ;;  %2031 = vmatprep.mubr.f32.mxu1 %v1135_v55 }
 0x2bc   :  { %v1105_v59 = vmul.f32 0.01, %v931_v54  ;;  %v946_v60 = vadd.f32 %v1959_v57, %v2377_v32  ;;  %2032 = vmatmul.mubr.f32.gmra.mxu1 %v1136_v58  ;;  %vm1073_vm4 = vcmp.gt.f32.partialorder %v931_v54, 0.0  ;;  %v1138_v2 = vsel %vm1074_vm5, %v936_v52, %v1106_v56 }
 0x2bd   :  { %v940_v61 = vpop.f32.mrf.mxu0 }
 0x2be   :  { %v941_v62 = vadd.f32 %v2377_v32, %v940_v61  ;;  %v1137_v63 = vsel %vm1073_vm4, %v931_v54, %v1105_v59  ;;  %v1108_v0 = vmul.f32 0.01, %v946_v60  ;;  %vm1076_vm7 = vcmp.gt.f32.partialorder %v946_v60, 0.0 }
 0x2bf   :  { %v1962_v1 = vpop.f32.mrf.mxu0  ;;  %2034 = vmatprep.mubr.f32.mxu1 %v1137_v63 }
 0x2c0   :  { %v1107_v3 = vmul.f32 0.01, %v941_v62  ;;  %v956_v4 = vadd.f32 %v1962_v1, %v2377_v32  ;;  %2035 = vmatmul.mubr.f32.gmra.mxu1 %v1138_v2  ;;  %vm1075_vm6 = vcmp.gt.f32.partialorder %v941_v62, 0.0  ;;  %v1140_v10 = vsel %vm1076_vm7, %v946_v60, %v1108_v0 }
 0x2c1   :  { %v950_v5 = vpop.f32.mrf.mxu0 }
 0x2c2   :  { %v951_v6 = vadd.f32 %v2377_v32, %v950_v5  ;;  %v1139_v7 = vsel %vm1075_vm6, %v941_v62, %v1107_v3  ;;  %v1110_v8 = vmul.f32 0.01, %v956_v4  ;;  %vm1078_vm9 = vcmp.gt.f32.partialorder %v956_v4, 0.0 }
 0x2c3   :  { %v1965_v9 = vpop.f32.mrf.mxu0  ;;  %2037 = vmatprep.mubr.f32.mxu1 %v1139_v7 }
 0x2c4   :  { %v1109_v11 = vmul.f32 0.01, %v951_v6  ;;  %v966_v12 = vadd.f32 %v1965_v9, %v2377_v32  ;;  %2038 = vmatmul.mubr.f32.gmra.mxu1 %v1140_v10  ;;  %vm1077_vm8 = vcmp.gt.f32.partialorder %v951_v6, 0.0  ;;  %v1142_v19 = vsel %vm1078_vm9, %v956_v4, %v1110_v8 }
 0x2c5   :  { %v960_v13 = vpop.f32.mrf.mxu0 }
 0x2c6   :  { %v961_v15 = vadd.f32 %v2377_v32, %v960_v13  ;;  %v1141_v16 = vsel %vm1077_vm8, %v951_v6, %v1109_v11  ;;  %v1112_v17 = vmul.f32 0.01, %v966_v12  ;;  %vm1080_vm11 = vcmp.gt.f32.partialorder %v966_v12, 0.0 }
 0x2c7   :  { %v1968_v18 = vpop.f32.mrf.mxu0  ;;  %2040 = vmatprep.mubr.f32.mxu1 %v1141_v16 }
 0x2c8   :  { %v1111_v14 = vmul.f32 0.01, %v961_v15  ;;  %v976_v20 = vadd.f32 %v1968_v18, %v2377_v32  ;;  %2041 = vmatmul.mubr.f32.gmra.mxu1 %v1142_v19  ;;  %vm1079_vm10 = vcmp.gt.f32.partialorder %v961_v15, 0.0  ;;  %v1144_v26 = vsel %vm1080_vm11, %v966_v12, %v1112_v17 }
 0x2c9   :  { %v970_v21 = vpop.f32.mrf.mxu0 }
 0x2ca   :  { %v971_v22 = vadd.f32 %v2377_v32, %v970_v21  ;;  %v1143_v23 = vsel %vm1079_vm10, %v961_v15, %v1111_v14  ;;  %v1114_v24 = vmul.f32 0.01, %v976_v20  ;;  %vm1082_vm13 = vcmp.gt.f32.partialorder %v976_v20, 0.0 }
 0x2cb   :  { %v1971_v25 = vpop.f32.mrf.mxu0  ;;  %2043 = vmatprep.mubr.f32.mxu1 %v1143_v23 }
 0x2cc   :  { %v1113_v27 = vmul.f32 0.01, %v971_v22  ;;  %v986_v28 = vadd.f32 %v1971_v25, %v2377_v32  ;;  %2044 = vmatmul.mubr.f32.gmra.mxu1 %v1144_v26  ;;  %vm1081_vm12 = vcmp.gt.f32.partialorder %v971_v22, 0.0  ;;  %v1146_v35 = vsel %vm1082_vm13, %v976_v20, %v1114_v24 }
 0x2cd   :  { %v980_v29 = vpop.f32.mrf.mxu0 }
 0x2ce   :  { %v981_v30 = vadd.f32 %v2377_v32, %v980_v29  ;;  %v1145_v31 = vsel %vm1081_vm12, %v971_v22, %v1113_v27  ;;  %v1116_v33 = vmul.f32 0.01, %v986_v28  ;;  %vm1084_vm15 = vcmp.gt.f32.partialorder %v986_v28, 0.0 }
 0x2cf   :  { %v1974_v34 = vpop.f32.mrf.mxu0  ;;  %2046 = vmatprep.mubr.f32.mxu1 %v1145_v31 }
 0x2d0   :  { %v1115_v36 = vmul.f32 0.01, %v981_v30  ;;  %v996_v37 = vadd.f32 %v1974_v34, %v2377_v32  ;;  %2047 = vmatmul.mubr.f32.gmra.mxu1 %v1146_v35  ;;  %vm1083_vm14 = vcmp.gt.f32.partialorder %v981_v30, 0.0  ;;  %v1148_v43 = vsel %vm1084_vm15, %v986_v28, %v1116_v33 }
 0x2d1   :  { %v990_v38 = vpop.f32.mrf.mxu0 }
 0x2d2   :  { %v991_v39 = vadd.f32 %v2377_v32, %v990_v38  ;;  %v1147_v40 = vsel %vm1083_vm14, %v981_v30, %v1115_v36  ;;  %v1118_v41 = vmul.f32 0.01, %v996_v37  ;;  %vm1086_vm1 = vcmp.gt.f32.partialorder %v996_v37, 0.0 }
 0x2d3   :  { %v1977_v42 = vpop.f32.mrf.mxu0  ;;  %2049 = vmatprep.mubr.f32.mxu1 %v1147_v40 }
 0x2d4   :  { %v1117_v44 = vmul.f32 0.01, %v991_v39  ;;  %v1006_v45 = vadd.f32 %v1977_v42, %v2377_v32  ;;  %2050 = vmatmul.mubr.f32.gmra.mxu1 %v1148_v43  ;;  %vm1085_vm0 = vcmp.gt.f32.partialorder %v991_v39, 0.0  ;;  %v1150_v51 = vsel %vm1086_vm1, %v996_v37, %v1118_v41 }
 0x2d5   :  { %v1000_v46 = vpop.f32.mrf.mxu0 }
 0x2d6   :  { %v1001_v47 = vadd.f32 %v2377_v32, %v1000_v46  ;;  %v1149_v48 = vsel %vm1085_vm0, %v991_v39, %v1117_v44  ;;  %v1120_v49 = vmul.f32 0.01, %v1006_v45  ;;  %vm1088_vm3 = vcmp.gt.f32.partialorder %v1006_v45, 0.0  ;;  %v2414_v39 = vld [vmem:[%s2462_s8] ss:$0 sm:$0xff]  ;;  %s2219_s8 = smov [#allocation11]  }
 0x2d7   :  { %v1980_v50 = vpop.f32.mrf.mxu0  ;;  %2052 = vmatprep.mubr.f32.mxu1 %v1149_v48  ;;  %s1546_s17 = sshll.u32 %s2219_s8, 4  ;;  %s1547_s17 = int_to_ptr.vmem [resolvable:$true] %s1546_s17 }
 0x2d8   :  { %v1119_v52 = vmul.f32 0.01, %v1001_v47  ;;  %v1016_v53 = vadd.f32 %v1980_v50, %v2377_v32  ;;  %2053 = vmatmul.mubr.f32.gmra.mxu1 %v1150_v51  ;;  %vm1087_vm2 = vcmp.gt.f32.partialorder %v1001_v47, 0.0  ;;  %v1152_v59 = vsel %vm1088_vm3, %v1006_v45, %v1120_v49  ;;  %s2184_s18 = scalar_lea.vmem %s1547_s17, 4096  ;;  %p2189_p12 = scmp.lt.s32.totalorder %s1547_s17, %s1547_s17 }
 0x2d9   :  { %v1010_v54 = vpop.f32.mrf.mxu0  ;;  %p2185_p11 = scmp.ne.s32.totalorder %s1547_s17, %s2184_s18  ;;  %p2190_p13 = scmp.lt.s32.totalorder %s2184_s18, %s2184_s18 }
 0x2da   :  { %v1011_v55 = vadd.f32 %v2377_v32, %v1010_v54  ;;  %v1151_v56 = vsel %vm1087_vm2, %v1001_v47, %v1119_v52  ;;  %v1122_v57 = vmul.f32 0.01, %v1016_v53  ;;  %vm1090_vm5 = vcmp.gt.f32.partialorder %v1016_v53, 0.0 }
 0x2db   :  { %v1983_v58 = vpop.f32.mrf.mxu0  ;;  %2055 = vmatprep.mubr.f32.mxu1 %v1151_v56  ;;  %p2191_p0 = por %p2190_p13, %p2189_p12 }
 0x2dc   :  { %v1121_v60 = vmul.f32 0.01, %v1011_v55  ;;  %v1026_v61 = vadd.f32 %v1983_v58, %v2377_v32  ;;  %2056 = vmatmul.mubr.f32.gmra.mxu1 %v1152_v59  ;;  %vm1089_vm4 = vcmp.gt.f32.partialorder %v1011_v55, 0.0  ;;  %v1154_v3 = vsel %vm1090_vm5, %v1016_v53, %v1122_v57 }
 0x2dd   :  { %v1020_v62 = vpop.f32.mrf.mxu0  ;;  %p2192_p1 = pnand %p2191_p0, %p2185_p11 }
 0x2de   :  { %v1021_v63 = vadd.f32 %v2377_v32, %v1020_v62  ;;  %v1153_v0 = vsel %vm1089_vm4, %v1011_v55, %v1121_v60  ;;  %v1124_v1 = vmul.f32 0.01, %v1026_v61  ;;  %vm1092_vm7 = vcmp.gt.f32.partialorder %v1026_v61, 0.0 }
 0x2df   :  { %v1986_v2 = vpop.f32.mrf.mxu0  ;;  %2058 = vmatprep.mubr.f32.mxu1 %v1153_v0 }
 0x2e0   :  { %v1123_v4 = vmul.f32 0.01, %v1021_v63  ;;  %v1036_v5 = vadd.f32 %v1986_v2, %v2377_v32  ;;  %2059 = vmatmul.mubr.f32.gmra.mxu1 %v1154_v3  ;;  %vm1091_vm6 = vcmp.gt.f32.partialorder %v1021_v63, 0.0  ;;  %v1156_v11 = vsel %vm1092_vm7, %v1026_v61, %v1124_v1 }
 0x2e1   :  { %v1030_v6 = vpop.f32.mrf.mxu0 }
 0x2e2   :  { %v1031_v7 = vadd.f32 %v2377_v32, %v1030_v6  ;;  %v1155_v8 = vsel %vm1091_vm6, %v1021_v63, %v1123_v4  ;;  %v1126_v9 = vmul.f32 0.01, %v1036_v5  ;;  %vm1094_vm9 = vcmp.gt.f32.partialorder %v1036_v5, 0.0 }
 0x2e3   :  { %v1989_v10 = vpop.f32.mrf.mxu0  ;;  %2061 = vmatprep.mubr.f32.mxu1 %v1155_v8 }
 0x2e4   :  { %v1125_v12 = vmul.f32 0.01, %v1031_v7  ;;  %v1046_v13 = vadd.f32 %v1989_v10, %v2377_v32  ;;  %2062 = vmatmul.mubr.f32.gmra.mxu1 %v1156_v11  ;;  %vm1093_vm8 = vcmp.gt.f32.partialorder %v1031_v7, 0.0  ;;  %v1158_v14 = vsel %vm1094_vm9, %v1036_v5, %v1126_v9 }
 0x2e5   :  { %v1040_v15 = vpop.f32.mrf.mxu0 }
 0x2e6   :  { %v1041_v16 = vadd.f32 %v2377_v32, %v1040_v15  ;;  %v1157_v17 = vsel %vm1093_vm8, %v1031_v7, %v1125_v12  ;;  %v1128_v18 = vmul.f32 0.01, %v1046_v13  ;;  %vm1096_vm11 = vcmp.gt.f32.partialorder %v1046_v13, 0.0 }
 0x2e7   :  { %v1992_v19 = vpop.f32.mrf.mxu0  ;;  %2064 = vmatprep.mubr.f32.mxu1 %v1157_v17 }
 0x2e8   :  { %v1127_v20 = vmul.f32 0.01, %v1041_v16  ;;  %v1056_v21 = vadd.f32 %v1992_v19, %v2377_v32  ;;  %2065 = vmatmul.mubr.f32.gmra.mxu1 %v1158_v14  ;;  %vm1095_vm10 = vcmp.gt.f32.partialorder %v1041_v16, 0.0  ;;  %v1160_v27 = vsel %vm1096_vm11, %v1046_v13, %v1128_v18 }
 0x2e9   :  { %v1050_v22 = vpop.f32.mrf.mxu0 }
 0x2ea   :  { %v1051_v23 = vadd.f32 %v2377_v32, %v1050_v22  ;;  %v1159_v24 = vsel %vm1095_vm10, %v1041_v16, %v1127_v20  ;;  %v1130_v25 = vmul.f32 0.01, %v1056_v21  ;;  %vm1098_vm13 = vcmp.gt.f32.partialorder %v1056_v21, 0.0 }
 0x2eb   :  { %v1995_v26 = vpop.f32.mrf.mxu0  ;;  %2067 = vmatprep.mubr.f32.mxu1 %v1159_v24 }
 0x2ec   :  { %v1129_v28 = vmul.f32 0.01, %v1051_v23  ;;  %v1066_v29 = vadd.f32 %v1995_v26, %v2377_v32  ;;  %2068 = vmatmul.mubr.f32.gmra.mxu1 %v1160_v27  ;;  %vm1097_vm12 = vcmp.gt.f32.partialorder %v1051_v23, 0.0  ;;  %v1162_v35 = vsel %vm1098_vm13, %v1056_v21, %v1130_v25 }
 0x2ed   :  { %v1060_v30 = vpop.f32.mrf.mxu0 }
 0x2ee   :  { %v1061_v31 = vadd.f32 %v2377_v32, %v1060_v30  ;;  %v1161_v33 = vsel %vm1097_vm12, %v1051_v23, %v1129_v28  ;;  %v1132_v34 = vmul.f32 0.01, %v1066_v29  ;;  %vm1100_vm15 = vcmp.gt.f32.partialorder %v1066_v29, 0.0 }
 0x2ef   :  { %2070 = vmatprep.mubr.f32.mxu1 %v1161_v33 }
 0x2f0   :  { %v1131_v36 = vmul.f32 0.01, %v1061_v31  ;;  %2071 = vmatmul.mubr.f32.gmra.mxu1 %v1162_v35  ;;  %vm1099_vm14 = vcmp.gt.f32.partialorder %v1061_v31, 0.0  ;;  %v1164_v38 = vsel %vm1100_vm15, %v1066_v29, %v1132_v34 }
 0x2f2   :  { %v1163_v37 = vsel %vm1099_vm14, %v1061_v31, %v1131_v36 }
 0x2f3   :  { %2073 = vmatprep.mubr.f32.mxu1 %v1163_v37 }
 0x2f4   :  { %2074 = vmatmul.mubr.f32.gmra.mxu1 %v1164_v38 }
 0x378   :  { %v2030_v40 = vpop.f32.mrf.mxu1 }
 0x379   :  { %v1260_v32 = vadd.f32 %v2030_v40, %v2414_v39 }
 0x37a   :  { %v1254_v41 = vpop.f32.mrf.mxu1 }
 0x37b   :  { %vm1414_vm0 = vcmp.gt.f32.partialorder %v1260_v32, 0.0  ;;  %v1446_v42 = vmul.f32 0.01, %v1260_v32  ;;  %v1255_v43 = vadd.f32 %v2414_v39, %v1254_v41 }
 0x37c   :  { %v2033_v44 = vpop.f32.mrf.mxu1 }
 0x37d   :  { %v1478_v45 = vsel %vm1414_vm0, %v1260_v32, %v1446_v42  ;;  %vm1413_vm1 = vcmp.gt.f32.partialorder %v1255_v43, 0.0  ;;  %v1445_v46 = vmul.f32 0.01, %v1255_v43  ;;  %v1270_v47 = vadd.f32 %v2033_v44, %v2414_v39 }
 0x37e   :  { %1510 = vst [vmem:[#allocation11 + $0x8] sm:$0xff] %v1478_v45  ;;  %v1264_v48 = vpop.f32.mrf.mxu1 }
 0x37f   :  { %v1477_v49 = vsel %vm1413_vm1, %v1255_v43, %v1445_v46  ;;  %vm1416_vm2 = vcmp.gt.f32.partialorder %v1270_v47, 0.0  ;;  %v1448_v50 = vmul.f32 0.01, %v1270_v47  ;;  %v1265_v51 = vadd.f32 %v2414_v39, %v1264_v48 }
 0x380   :  { %1509 = vst [vmem:[#allocation11] sm:$0xff] %v1477_v49  ;;  %v2036_v52 = vpop.f32.mrf.mxu1 }
 0x381   :  { %v1480_v53 = vsel %vm1416_vm2, %v1270_v47, %v1448_v50  ;;  %vm1415_vm3 = vcmp.gt.f32.partialorder %v1265_v51, 0.0  ;;  %v1447_v54 = vmul.f32 0.01, %v1265_v51  ;;  %v1280_v55 = vadd.f32 %v2036_v52, %v2414_v39 }
 0x382   :  { %1512 = vst [vmem:[#allocation11 + $0x18] sm:$0xff] %v1480_v53  ;;  %v1274_v56 = vpop.f32.mrf.mxu1 }
 0x383   :  { %v1479_v57 = vsel %vm1415_vm3, %v1265_v51, %v1447_v54  ;;  %vm1418_vm4 = vcmp.gt.f32.partialorder %v1280_v55, 0.0  ;;  %v1450_v58 = vmul.f32 0.01, %v1280_v55  ;;  %v1275_v59 = vadd.f32 %v2414_v39, %v1274_v56 }
 0x384   :  { %1511 = vst [vmem:[#allocation11 + $0x10] sm:$0xff] %v1479_v57  ;;  %v2039_v60 = vpop.f32.mrf.mxu1 }
 0x385   :  { %v1482_v61 = vsel %vm1418_vm4, %v1280_v55, %v1450_v58  ;;  %vm1417_vm5 = vcmp.gt.f32.partialorder %v1275_v59, 0.0  ;;  %v1449_v62 = vmul.f32 0.01, %v1275_v59  ;;  %v1290_v63 = vadd.f32 %v2039_v60, %v2414_v39 }
 0x386   :  { %1514 = vst [vmem:[#allocation11 + $0x28] sm:$0xff] %v1482_v61  ;;  %v1284_v0 = vpop.f32.mrf.mxu1 }
 0x387   :  { %v1481_v1 = vsel %vm1417_vm5, %v1275_v59, %v1449_v62  ;;  %vm1420_vm6 = vcmp.gt.f32.partialorder %v1290_v63, 0.0  ;;  %v1452_v2 = vmul.f32 0.01, %v1290_v63  ;;  %v1285_v3 = vadd.f32 %v2414_v39, %v1284_v0 }
 0x388   :  { %1513 = vst [vmem:[#allocation11 + $0x20] sm:$0xff] %v1481_v1  ;;  %v2042_v4 = vpop.f32.mrf.mxu1 }
 0x389   :  { %v1484_v5 = vsel %vm1420_vm6, %v1290_v63, %v1452_v2  ;;  %vm1419_vm7 = vcmp.gt.f32.partialorder %v1285_v3, 0.0  ;;  %v1451_v6 = vmul.f32 0.01, %v1285_v3  ;;  %v1300_v7 = vadd.f32 %v2042_v4, %v2414_v39 }
 0x38a   :  { %1516 = vst [vmem:[#allocation11 + $0x38] sm:$0xff] %v1484_v5  ;;  %v1294_v8 = vpop.f32.mrf.mxu1 }
 0x38b   :  { %v1483_v9 = vsel %vm1419_vm7, %v1285_v3, %v1451_v6  ;;  %vm1422_vm8 = vcmp.gt.f32.partialorder %v1300_v7, 0.0  ;;  %v1454_v10 = vmul.f32 0.01, %v1300_v7  ;;  %v1295_v11 = vadd.f32 %v2414_v39, %v1294_v8 }
 0x38c   :  { %1515 = vst [vmem:[#allocation11 + $0x30] sm:$0xff] %v1483_v9  ;;  %v2045_v12 = vpop.f32.mrf.mxu1 }
 0x38d   :  { %v1486_v13 = vsel %vm1422_vm8, %v1300_v7, %v1454_v10  ;;  %vm1421_vm9 = vcmp.gt.f32.partialorder %v1295_v11, 0.0  ;;  %v1453_v15 = vmul.f32 0.01, %v1295_v11  ;;  %v1310_v16 = vadd.f32 %v2045_v12, %v2414_v39 }
 0x38e   :  { %1518 = vst [vmem:[#allocation11 + $0x48] sm:$0xff] %v1486_v13  ;;  %v1304_v17 = vpop.f32.mrf.mxu1 }
 0x38f   :  { %v1485_v18 = vsel %vm1421_vm9, %v1295_v11, %v1453_v15  ;;  %vm1424_vm10 = vcmp.gt.f32.partialorder %v1310_v16, 0.0  ;;  %v1456_v19 = vmul.f32 0.01, %v1310_v16  ;;  %v1305_v14 = vadd.f32 %v2414_v39, %v1304_v17 }
 0x390   :  { %1517 = vst [vmem:[#allocation11 + $0x40] sm:$0xff] %v1485_v18  ;;  %v2048_v20 = vpop.f32.mrf.mxu1 }
 0x391   :  { %v1488_v21 = vsel %vm1424_vm10, %v1310_v16, %v1456_v19  ;;  %vm1423_vm11 = vcmp.gt.f32.partialorder %v1305_v14, 0.0  ;;  %v1455_v22 = vmul.f32 0.01, %v1305_v14  ;;  %v1320_v23 = vadd.f32 %v2048_v20, %v2414_v39 }
 0x392   :  { %1520 = vst [vmem:[#allocation11 + $0x58] sm:$0xff] %v1488_v21  ;;  %v1314_v24 = vpop.f32.mrf.mxu1 }
 0x393   :  { %v1487_v25 = vsel %vm1423_vm11, %v1305_v14, %v1455_v22  ;;  %vm1426_vm12 = vcmp.gt.f32.partialorder %v1320_v23, 0.0  ;;  %v1458_v26 = vmul.f32 0.01, %v1320_v23  ;;  %v1315_v27 = vadd.f32 %v2414_v39, %v1314_v24 }
 0x394   :  { %1519 = vst [vmem:[#allocation11 + $0x50] sm:$0xff] %v1487_v25  ;;  %v2051_v28 = vpop.f32.mrf.mxu1 }
 0x395   :  { %v1490_v29 = vsel %vm1426_vm12, %v1320_v23, %v1458_v26  ;;  %vm1425_vm13 = vcmp.gt.f32.partialorder %v1315_v27, 0.0  ;;  %v1457_v30 = vmul.f32 0.01, %v1315_v27  ;;  %v1330_v31 = vadd.f32 %v2051_v28, %v2414_v39 }
 0x396   :  { %1522 = vst [vmem:[#allocation11 + $0x68] sm:$0xff] %v1490_v29  ;;  %v1324_v33 = vpop.f32.mrf.mxu1 }
 0x397   :  { %v1489_v34 = vsel %vm1425_vm13, %v1315_v27, %v1457_v30  ;;  %vm1428_vm14 = vcmp.gt.f32.partialorder %v1330_v31, 0.0  ;;  %v1460_v35 = vmul.f32 0.01, %v1330_v31  ;;  %v1325_v36 = vadd.f32 %v2414_v39, %v1324_v33 }
 0x398   :  { %1521 = vst [vmem:[#allocation11 + $0x60] sm:$0xff] %v1489_v34  ;;  %v2054_v37 = vpop.f32.mrf.mxu1 }
 0x399   :  { %v1492_v38 = vsel %vm1428_vm14, %v1330_v31, %v1460_v35  ;;  %vm1427_vm15 = vcmp.gt.f32.partialorder %v1325_v36, 0.0  ;;  %v1459_v40 = vmul.f32 0.01, %v1325_v36  ;;  %v1340_v32 = vadd.f32 %v2054_v37, %v2414_v39 }
 0x39a   :  { %1524 = vst [vmem:[#allocation11 + $0x78] sm:$0xff] %v1492_v38  ;;  %v1334_v41 = vpop.f32.mrf.mxu1 }
 0x39b   :  { %v1491_v42 = vsel %vm1427_vm15, %v1325_v36, %v1459_v40  ;;  %vm1430_vm0 = vcmp.gt.f32.partialorder %v1340_v32, 0.0  ;;  %v1462_v43 = vmul.f32 0.01, %v1340_v32  ;;  %v1335_v44 = vadd.f32 %v2414_v39, %v1334_v41 }
 0x39c   :  { %1523 = vst [vmem:[#allocation11 + $0x70] sm:$0xff] %v1491_v42  ;;  %v2057_v45 = vpop.f32.mrf.mxu1 }
 0x39d   :  { %v1494_v46 = vsel %vm1430_vm0, %v1340_v32, %v1462_v43  ;;  %vm1429_vm1 = vcmp.gt.f32.partialorder %v1335_v44, 0.0  ;;  %v1461_v47 = vmul.f32 0.01, %v1335_v44  ;;  %v1350_v48 = vadd.f32 %v2057_v45, %v2414_v39 }
 0x39e   :  { %1526 = vst [vmem:[#allocation11 + $0x88] sm:$0xff] %v1494_v46  ;;  %v1344_v49 = vpop.f32.mrf.mxu1 }
 0x39f   :  { %v1493_v50 = vsel %vm1429_vm1, %v1335_v44, %v1461_v47  ;;  %vm1432_vm2 = vcmp.gt.f32.partialorder %v1350_v48, 0.0  ;;  %v1464_v51 = vmul.f32 0.01, %v1350_v48  ;;  %v1345_v52 = vadd.f32 %v2414_v39, %v1344_v49 }
 0x3a0   :  { %1525 = vst [vmem:[#allocation11 + $0x80] sm:$0xff] %v1493_v50  ;;  %v2060_v53 = vpop.f32.mrf.mxu1 }
 0x3a1   :  { %v1496_v54 = vsel %vm1432_vm2, %v1350_v48, %v1464_v51  ;;  %vm1431_vm3 = vcmp.gt.f32.partialorder %v1345_v52, 0.0  ;;  %v1463_v55 = vmul.f32 0.01, %v1345_v52  ;;  %v1360_v56 = vadd.f32 %v2060_v53, %v2414_v39 }
 0x3a2   :  { %1528 = vst [vmem:[#allocation11 + $0x98] sm:$0xff] %v1496_v54  ;;  %v1354_v57 = vpop.f32.mrf.mxu1 }
 0x3a3   :  { %v1495_v58 = vsel %vm1431_vm3, %v1345_v52, %v1463_v55  ;;  %vm1434_vm4 = vcmp.gt.f32.partialorder %v1360_v56, 0.0  ;;  %v1466_v59 = vmul.f32 0.01, %v1360_v56  ;;  %v1355_v60 = vadd.f32 %v2414_v39, %v1354_v57 }
 0x3a4   :  { %1527 = vst [vmem:[#allocation11 + $0x90] sm:$0xff] %v1495_v58  ;;  %v2063_v61 = vpop.f32.mrf.mxu1 }
 0x3a5   :  { %v1498_v62 = vsel %vm1434_vm4, %v1360_v56, %v1466_v59  ;;  %vm1433_vm5 = vcmp.gt.f32.partialorder %v1355_v60, 0.0  ;;  %v1465_v63 = vmul.f32 0.01, %v1355_v60  ;;  %v1370_v0 = vadd.f32 %v2063_v61, %v2414_v39 }
 0x3a6   :  { %1530 = vst [vmem:[#allocation11 + $0xa8] sm:$0xff] %v1498_v62  ;;  %v1364_v1 = vpop.f32.mrf.mxu1 }
 0x3a7   :  { %v1497_v2 = vsel %vm1433_vm5, %v1355_v60, %v1465_v63  ;;  %vm1436_vm6 = vcmp.gt.f32.partialorder %v1370_v0, 0.0  ;;  %v1468_v3 = vmul.f32 0.01, %v1370_v0  ;;  %v1365_v4 = vadd.f32 %v2414_v39, %v1364_v1 }
 0x3a8   :  { %1529 = vst [vmem:[#allocation11 + $0xa0] sm:$0xff] %v1497_v2  ;;  %v2066_v5 = vpop.f32.mrf.mxu1 }
 0x3a9   :  { %v1500_v6 = vsel %vm1436_vm6, %v1370_v0, %v1468_v3  ;;  %vm1435_vm7 = vcmp.gt.f32.partialorder %v1365_v4, 0.0  ;;  %v1467_v7 = vmul.f32 0.01, %v1365_v4  ;;  %v1380_v8 = vadd.f32 %v2066_v5, %v2414_v39 }
 0x3aa   :  { %1532 = vst [vmem:[#allocation11 + $0xb8] sm:$0xff] %v1500_v6  ;;  %v1374_v9 = vpop.f32.mrf.mxu1 }
 0x3ab   :  { %v1499_v10 = vsel %vm1435_vm7, %v1365_v4, %v1467_v7  ;;  %vm1438_vm8 = vcmp.gt.f32.partialorder %v1380_v8, 0.0  ;;  %v1470_v11 = vmul.f32 0.01, %v1380_v8  ;;  %v1375_v12 = vadd.f32 %v2414_v39, %v1374_v9 }
 0x3ac   :  { %1531 = vst [vmem:[#allocation11 + $0xb0] sm:$0xff] %v1499_v10  ;;  %v2069_v13 = vpop.f32.mrf.mxu1 }
 0x3ad   :  { %v1502_v15 = vsel %vm1438_vm8, %v1380_v8, %v1470_v11  ;;  %vm1437_vm9 = vcmp.gt.f32.partialorder %v1375_v12, 0.0  ;;  %v1469_v16 = vmul.f32 0.01, %v1375_v12  ;;  %v1390_v17 = vadd.f32 %v2069_v13, %v2414_v39 }
 0x3ae   :  { %1534 = vst [vmem:[#allocation11 + $0xc8] sm:$0xff] %v1502_v15  ;;  %v1384_v18 = vpop.f32.mrf.mxu1 }
 0x3af   :  { %v1501_v19 = vsel %vm1437_vm9, %v1375_v12, %v1469_v16  ;;  %vm1440_vm10 = vcmp.gt.f32.partialorder %v1390_v17, 0.0  ;;  %v1472_v14 = vmul.f32 0.01, %v1390_v17  ;;  %v1385_v20 = vadd.f32 %v2414_v39, %v1384_v18 }
 0x3b0   :  { %1533 = vst [vmem:[#allocation11 + $0xc0] sm:$0xff] %v1501_v19  ;;  %v2072_v21 = vpop.f32.mrf.mxu1 }
 0x3b1   :  { %v1504_v22 = vsel %vm1440_vm10, %v1390_v17, %v1472_v14  ;;  %vm1439_vm11 = vcmp.gt.f32.partialorder %v1385_v20, 0.0  ;;  %v1471_v23 = vmul.f32 0.01, %v1385_v20  ;;  %v1400_v24 = vadd.f32 %v2072_v21, %v2414_v39 }
 0x3b2   :  { %1536 = vst [vmem:[#allocation11 + $0xd8] sm:$0xff] %v1504_v22  ;;  %v1394_v25 = vpop.f32.mrf.mxu1 }
 0x3b3   :  { %v1503_v26 = vsel %vm1439_vm11, %v1385_v20, %v1471_v23  ;;  %vm1442_vm12 = vcmp.gt.f32.partialorder %v1400_v24, 0.0  ;;  %v1474_v27 = vmul.f32 0.01, %v1400_v24  ;;  %v1395_v28 = vadd.f32 %v2414_v39, %v1394_v25 }
 0x3b4   :  { %1535 = vst [vmem:[#allocation11 + $0xd0] sm:$0xff] %v1503_v26  ;;  %v2075_v29 = vpop.f32.mrf.mxu1 }
 0x3b5   :  { %v1506_v30 = vsel %vm1442_vm12, %v1400_v24, %v1474_v27  ;;  %vm1441_vm13 = vcmp.gt.f32.partialorder %v1395_v28, 0.0  ;;  %v1473_v31 = vmul.f32 0.01, %v1395_v28  ;;  %v1410_v33 = vadd.f32 %v2075_v29, %v2414_v39 }
 0x3b6   :  { %1538 = vst [vmem:[#allocation11 + $0xe8] sm:$0xff] %v1506_v30  ;;  %v1404_v34 = vpop.f32.mrf.mxu1 }
 0x3b7   :  { %v1505_v35 = vsel %vm1441_vm13, %v1395_v28, %v1473_v31  ;;  %vm1444_vm14 = vcmp.gt.f32.partialorder %v1410_v33, 0.0  ;;  %v1476_v36 = vmul.f32 0.01, %v1410_v33  ;;  %v1405_v37 = vadd.f32 %v2414_v39, %v1404_v34 }
 0x3b8   :  { %1537 = vst [vmem:[#allocation11 + $0xe0] sm:$0xff] %v1505_v35 }
 0x3b9   :  { %v1508_v38 = vsel %vm1444_vm14, %v1410_v33, %v1476_v36  ;;  %vm1443_vm15 = vcmp.gt.f32.partialorder %v1405_v37, 0.0  ;;  %v1475_v40 = vmul.f32 0.01, %v1405_v37 }
 0x3ba   :  { %1540 = vst [vmem:[#allocation11 + $0xf8] sm:$0xff] %v1508_v38 }
 0x3bb   :  { %v1507_v32 = vsel %vm1443_vm15, %v1405_v37, %v1475_v40 }
 0x3bc   :  { %1539 = vst [vmem:[#allocation11 + $0xf0] sm:$0xff] %v1507_v32 }
 0x3bd   :  { %2195 = shalt.err (!%p2192_p1)
}
 0x3be   :  { %1552 = dma.vmem_to_hbm [thread:$0]  %s1547_s17, 4096, %s2463_s9, [#allocation4], %s2214_s14, %s2214_s14, %s2215_s15  }
 0x3bf   :  { %2210 = dma.done.wait [#allocation4], 4096  }
 0x3c0   :  { %2211 = vsyncadd [#allocation4], 4294963200 }
 0x3c1   :  { %1556 = vsyncpa [#allocation3], 1 }
 0x3c2   :  { %1557 = vsyncpa [#allocation6], 1 }
 0x3c3   :  { %1558 = vsyncpa [#allocation9], 1 }
 0x3c4   :  { %1559 = vsyncpa [#allocation4], 1 }

</bundles_post_ra>
